<compile_context>
chip_gen: v6e
topology: v6e:2x2x1
jax: 0.10.0
libtpu: 0.0.40
codegen_flags: <defaults>
</compile_context>

<pallas_src>
import functools
import math

import jax
import jax.numpy as jnp
from jax import lax
from jax.experimental import pallas as pl
from jax.experimental.pallas import tpu as pltpu


_SQRT2_INV = 1.0 / math.sqrt(2.0)


# ----------------------------- in-kernel helpers -----------------------------

def _layernorm(x, w, b, eps=1e-5):
    # x: (rows, D) f32, w/b: (1, D) f32
    mu = jnp.mean(x, axis=-1, keepdims=True)
    var = jnp.mean((x - mu) ** 2, axis=-1, keepdims=True)
    return (x - mu) * lax.rsqrt(var + eps) * w + b


def _gelu(x):
    # exact (erf) GELU, matching torch nn.GELU() default
    return 0.5 * x * (1.0 + lax.erf(x * _SQRT2_INV))


# ------------------------------ kernel 1: LN1 + QKV ---------------------------

def ln_qkv_kernel(x_ref, lnw_ref, lnb_ref, wq_ref, wk_ref, wv_ref,
                  bq_ref, bk_ref, bv_ref, q_ref, k_ref, v_ref):
    xn = _layernorm(x_ref[...], lnw_ref[...], lnb_ref[...])
    xb = xn.astype(jnp.bfloat16)                      # bf16 MXU inputs
    for w_ref, b_ref, o_ref in ((wq_ref, bq_ref, q_ref),
                                (wk_ref, bk_ref, k_ref),
                                (wv_ref, bv_ref, v_ref)):
        o_ref[...] = (jnp.dot(xb, w_ref[...], preferred_element_type=jnp.float32)
                      + b_ref[...]).astype(o_ref.dtype)   # bf16 HBM intermediate


# --------------------------- kernel 2: per-batch attention --------------------

def attn_kernel(q_ref, k_ref, v_ref, o_ref, *, n_heads, head_dim):
    # blocks are (1, S, D) bf16 in natural layout; 1/sqrt(hd) is folded into W_q
    seq = q_ref.shape[1]

    def split_heads(ref):
        # (1, S, H*hd) -> (H, S, hd); VMEM-local layout plumbing (XLU slots)
        return jnp.swapaxes(ref[0].reshape(seq, n_heads, head_dim), 0, 1)

    q = split_heads(q_ref)
    k = split_heads(k_ref)
    v = split_heads(v_ref)
    # scores (H, S, S), f32 MXU accumulation
    s = jnp.einsum("hqd,hkd->hqk", q, k, preferred_element_type=jnp.float32)
    s = s - jnp.max(s, axis=-1, keepdims=True)
    p = jnp.exp(s)
    inv = pl.reciprocal(jnp.sum(p, axis=-1, keepdims=True), approx=True)  # (H,S,1)
    o = jnp.einsum("hqk,hkd->hqd", p.astype(jnp.bfloat16), v,
                   preferred_element_type=jnp.float32)
    o = o * inv                                       # normalize AFTER PV matmul
    # merge heads -> lane-dense (S, D) store, bf16 HBM intermediate
    o_ref[0] = (jnp.swapaxes(o, 0, 1)
                .reshape(seq, n_heads * head_dim)
                .astype(o_ref.dtype))


# ------------------ kernel 3: out-proj + residual + LN2 + FFN -----------------

def proj_ffn_kernel(ctx_ref, x_ref, wo_ref, bo_ref, lnw_ref, lnb_ref,
                    w1_ref, b1_ref, w2_ref, b2_ref, o_ref):
    attn = (jnp.dot(ctx_ref[...], wo_ref[...],
                    preferred_element_type=jnp.float32) + bo_ref[...])
    x1 = x_ref[...] + attn                            # residual 1 (f32)
    xn = _layernorm(x1, lnw_ref[...], lnb_ref[...])
    h = (jnp.dot(xn.astype(jnp.bfloat16), w1_ref[...],
                 preferred_element_type=jnp.float32) + b1_ref[...])
    g = _gelu(h)                                      # f32 elementwise
    y = (jnp.dot(g.astype(jnp.bfloat16), w2_ref[...],
                 preferred_element_type=jnp.float32) + b2_ref[...])
    o_ref[...] = x1 + y                               # residual 2


# ---------------------------------- wrapper -----------------------------------

def _vmem_limit_bytes():
    # Device-generation-aware VMEM limit: leave headroom below physical VMEM
    # (v7x = 64 MiB physical -> 48 MiB limit; v5e/v6e = 128 MiB -> 96 MiB).
    cap = 128 * 1024 * 1024
    try:
        cap = int(pltpu.get_tpu_info().vmem_capacity_bytes)
    except Exception:
        try:
            kind = jax.devices()[0].device_kind.lower()
            if "v7" in kind:
                cap = 64 * 1024 * 1024
        except Exception:
            pass
    return min((cap * 3) // 4, 112 * 1024 * 1024)


def _derive_row_tile(n, per_row_bytes, resident_bytes, vmem_limit):
    # Largest power-of-two row tile whose double-buffered working set fits the
    # VMEM budget left over after the resident (grid-invariant) weights.
    budget = max(vmem_limit - resident_bytes, vmem_limit // 8)
    for t in (512, 256, 128, 64, 32, 16, 8):
        if t <= max(n, 8) and t * per_row_bytes <= budget:
            return t
    return 8


def _invariant(arr):
    # Grid-invariant resident block (whole array, index_map -> origin).
    # NOTE: constant-index windows are kept resident by the pipeline; we do not
    # request extra buffering for them.
    return pl.BlockSpec(arr.shape, lambda *_: (0,) * arr.ndim)


@functools.partial(jax.jit, static_argnames=("n_heads",))
def transformer_block_forward(x, params, n_heads):
    B, S, D = x.shape
    H = n_heads
    hd = D // H
    N = B * S
    f32 = jnp.float32
    bf16 = jnp.bfloat16
    F = params["w1"].shape[1]

    ln1w, ln1b = params["ln1w"], params["ln1b"]
    ln2w, ln2b = params["ln2w"], params["ln2b"]

    # Fold softmax 1/sqrt(hd) into the query projection (free); cast matmul
    # weights to bf16 once (halves weight VMEM / HBM traffic).
    scale = 1.0 / math.sqrt(hd)
    wq = (params["wq"] * scale).astype(bf16)
    bq = (params["bq"] * scale).astype(f32)
    wk = params["wk"].astype(bf16)
    wv = params["wv"].astype(bf16)
    wo = params["wo"].astype(bf16)
    w1 = params["w1"].astype(bf16)
    w2 = params["w2"].astype(bf16)
    bk, bv = params["bk"], params["bv"]
    bo, b1, b2 = params["bo"], params["b1"], params["b2"]

    vmem_limit = _vmem_limit_bytes()
    cparams = pltpu.CompilerParams(
        dimension_semantics=("parallel",),            # megacore sharding on v7x
        vmem_limit_bytes=vmem_limit,
    )

    # ---- layout plumbing in the wrapper: tokens flattened to (N, D) rows ----
    x2 = x.reshape(N, D).astype(f32)                  # free reshape, no transpose

    # ---- kernel 1: LN1 + Q/K/V projections (row-tiled, weights resident) ----
    bt1 = _derive_row_tile(N, per_row_bytes=28 * D,
                           resident_bytes=3 * D * D * 2 * 2,
                           vmem_limit=vmem_limit)
    row1 = pl.BlockSpec((bt1, D), lambda i: (i, 0))
    q, k, v = pl.pallas_call(
        ln_qkv_kernel,
        grid=(pl.cdiv(N, bt1),),
        in_specs=[row1] + [_invariant(a) for a in
                           (ln1w, ln1b, wq, wk, wv, bq, bk, bv)],
        out_specs=[row1] * 3,
        out_shape=[jax.ShapeDtypeStruct((N, D), bf16)] * 3,   # bf16 intermediates
        compiler_params=cparams,
    )(x2, ln1w, ln1b, wq, wk, wv, bq, bk, bv)

    # ---- kernel 2: attention, gridded over batch (no wrapper transposes) ----
    batch_block = pl.BlockSpec((1, S, D), lambda b: (b, 0, 0))
    ctx = pl.pallas_call(
        functools.partial(attn_kernel, n_heads=H, head_dim=hd),
        grid=(B,),
        in_specs=[batch_block] * 3,
        out_specs=batch_block,
        out_shape=jax.ShapeDtypeStruct((B, S, D), bf16),       # bf16 intermediate
        compiler_params=cparams,
    )(q.reshape(B, S, D), k.reshape(B, S, D), v.reshape(B, S, D))

    ctx2 = ctx.reshape(N, D)                          # free reshape

    # ---- kernel 3: out-proj + residual + LN2 + FFN + residual (row-tiled) ----
    bt3 = _derive_row_tile(N, per_row_bytes=32 * D + 8 * F,
                           resident_bytes=(D * D + 2 * D * F) * 2 * 2,
                           vmem_limit=vmem_limit)
    row3f = pl.BlockSpec((bt3, D), lambda i: (i, 0))
    out = pl.pallas_call(
        proj_ffn_kernel,
        grid=(pl.cdiv(N, bt3),),
        in_specs=[row3f, row3f] + [_invariant(a) for a in
                                   (wo, bo, ln2w, ln2b, w1, b1, w2, b2)],
        out_specs=row3f,
        out_shape=jax.ShapeDtypeStruct((N, D), f32),
        compiler_params=cparams,
    )(ctx2, x2, wo, bo, ln2w, ln2b, w1, b1, w2, b2)

    return out.reshape(B, S, D)


# ------------------------------ parameters & reference ------------------------

def init_block_params(key, embed_dim, ffn_dim):
    D, F = embed_dim, ffn_dim
    std = 0.02
    ks = jax.random.split(key, 12)

    def normal(k, shape):
        return (std * jax.random.normal(k, shape)).astype(jnp.float32)

    return dict(
        ln1w=jnp.ones((1, D), jnp.float32), ln1b=jnp.zeros((1, D), jnp.float32),
        # MultiheadAttention in_proj (3D, D) split into per-q/k/v weights and
        # pre-transposed to (in, out) so kernels compute x @ W + b.
        wq=normal(ks[0], (D, D)).T, wk=normal(ks[1], (D, D)).T,
        wv=normal(ks[2], (D, D)).T,
        bq=normal(ks[3], (1, D)), bk=normal(ks[4], (1, D)), bv=normal(ks[5], (1, D)),
        wo=normal(ks[6], (D, D)).T, bo=normal(ks[7], (1, D)),
        ln2w=jnp.ones((1, D), jnp.float32), ln2b=jnp.zeros((1, D), jnp.float32),
        w1=normal(ks[8], (F, D)).T, b1=normal(ks[9], (1, F)),
        w2=normal(ks[10], (D, F)).T, b2=normal(ks[11], (1, D)),
    )


def transformer_block_reference(x, params, n_heads):
    # pure-JAX f32 reference of the PyTorch forward (dropout = identity)
    B, S, D = x.shape
    H = n_heads
    hd = D // H
    x = x.astype(jnp.float32)

    def ln(t, w, b, eps=1e-5):
        mu = jnp.mean(t, -1, keepdims=True)
        var = jnp.mean((t - mu) ** 2, -1, keepdims=True)
        return (t - mu) / jnp.sqrt(var + eps) * w + b

    xn = ln(x, params["ln1w"][0], params["ln1b"][0])
    q = xn @ params["wq"] + params["bq"][0]
    k = xn @ params["wk"] + params["bk"][0]
    v = xn @ params["wv"] + params["bv"][0]

    def heads(t):
        return t.reshape(B, S, H, hd).transpose(0, 2, 1, 3)

    s = jnp.einsum("bhqd,bhkd->bhqk", heads(q), heads(k)) / math.sqrt(hd)
    p = jax.nn.softmax(s, axis=-1)
    ctx = jnp.einsum("bhqk,bhkd->bhqd", p, heads(v))
    ctx = ctx.transpose(0, 2, 1, 3).reshape(B, S, D)
    x = x + (ctx @ params["wo"] + params["bo"][0])

    xn2 = ln(x, params["ln2w"][0], params["ln2b"][0])
    h = xn2 @ params["w1"] + params["b1"][0]
    g = 0.5 * h * (1.0 + lax.erf(h / math.sqrt(2.0)))
    return x + (g @ params["w2"] + params["b2"][0])


# ------------------------------------ main ------------------------------------

if __name__ == "__main__":
    n_heads, embed_dim, ffn_dim = 4, 64, 128
    B, S = 2, 16

    key = jax.random.PRNGKey(0)
    k_params, k_x = jax.random.split(key)
    params = init_block_params(k_params, embed_dim, ffn_dim)
    x = jax.random.normal(k_x, (B, S, embed_dim), dtype=jnp.float32)

    out = transformer_block_forward(x, params, n_heads=n_heads)
    jax.block_until_ready(out)

    assert out.shape == (B, S, embed_dim)
    assert bool(jnp.all(jnp.isfinite(out)))

    ref = transformer_block_reference(x, params, n_heads)
    max_err = float(jnp.max(jnp.abs(out - ref)))
    assert max_err < 5e-2, f"mismatch vs reference: {max_err}"

    print("KERNEL_OK")
</pallas_src>

<mosaic_0001>
module attributes {stable_mosaic.version = 11 : i64} {
  func.func @ln_qkv_kernel(%arg0: i32, %arg1: memref<32x64xf32, #tpu.memory_space<vmem>>, %arg2: memref<1x64xf32, #tpu.memory_space<vmem>>, %arg3: memref<1x64xf32, #tpu.memory_space<vmem>>, %arg4: memref<64x64xbf16, #tpu.memory_space<vmem>>, %arg5: memref<64x64xbf16, #tpu.memory_space<vmem>>, %arg6: memref<64x64xbf16, #tpu.memory_space<vmem>>, %arg7: memref<1x64xf32, #tpu.memory_space<vmem>>, %arg8: memref<1x64xf32, #tpu.memory_space<vmem>>, %arg9: memref<1x64xf32, #tpu.memory_space<vmem>>, %arg10: memref<32x64xbf16, #tpu.memory_space<vmem>>, %arg11: memref<32x64xbf16, #tpu.memory_space<vmem>>, %arg12: memref<32x64xbf16, #tpu.memory_space<vmem>>) attributes {dimension_semantics = [#tpu.dimension_semantics<parallel>], iteration_bounds = array<i64: 1>, scalar_prefetch = 0 : i64, scratch_operands = 0 : i64, tpu.core_type = #tpu.core_type<tc>, window_params = [{transform_indices = @transform_0, window_bounds = array<i64: 32, 64>}, {pipeline_mode = #tpu.pipeline_mode<synchronous>, transform_indices = @transform_1, window_bounds = array<i64: 1, 64>}, {pipeline_mode = #tpu.pipeline_mode<synchronous>, transform_indices = @transform_2, window_bounds = array<i64: 1, 64>}, {pipeline_mode = #tpu.pipeline_mode<synchronous>, transform_indices = @transform_3, window_bounds = array<i64: 64, 64>}, {pipeline_mode = #tpu.pipeline_mode<synchronous>, transform_indices = @transform_4, window_bounds = array<i64: 64, 64>}, {pipeline_mode = #tpu.pipeline_mode<synchronous>, transform_indices = @transform_5, window_bounds = array<i64: 64, 64>}, {pipeline_mode = #tpu.pipeline_mode<synchronous>, transform_indices = @transform_6, window_bounds = array<i64: 1, 64>}, {pipeline_mode = #tpu.pipeline_mode<synchronous>, transform_indices = @transform_7, window_bounds = array<i64: 1, 64>}, {pipeline_mode = #tpu.pipeline_mode<synchronous>, transform_indices = @transform_8, window_bounds = array<i64: 1, 64>}, {transform_indices = @transform_9, window_bounds = array<i64: 32, 64>}, {transform_indices = @transform_10, window_bounds = array<i64: 32, 64>}, {transform_indices = @transform_11, window_bounds = array<i64: 32, 64>}]} {
    %c0 = arith.constant 0 : index
    %c0_0 = arith.constant 0 : index
    %0 = vector.load %arg1[%c0, %c0_0] : memref<32x64xf32, #tpu.memory_space<vmem>>, vector<32x64xf32>
    %c0_1 = arith.constant 0 : index
    %c0_2 = arith.constant 0 : index
    %1 = vector.load %arg2[%c0_1, %c0_2] : memref<1x64xf32, #tpu.memory_space<vmem>>, vector<1x64xf32>
    %c0_3 = arith.constant 0 : index
    %c0_4 = arith.constant 0 : index
    %2 = vector.load %arg3[%c0_3, %c0_4] : memref<1x64xf32, #tpu.memory_space<vmem>>, vector<1x64xf32>
    %cst = arith.constant dense<0.000000e+00> : vector<32xf32>
    %3 = vector.multi_reduction <add>, %0, %cst [1] : vector<32x64xf32> to vector<32xf32>
    %4 = vector.shape_cast %3 : vector<32xf32> to vector<32x1xf32>
    %cst_5 = arith.constant 6.400000e+01 : f32
    %5 = vector.broadcast %cst_5 : f32 to vector<32x1xf32>
    %6 = arith.divf %4, %5 : vector<32x1xf32>
    %7 = vector.broadcast %6 : vector<32x1xf32> to vector<32x64xf32>
    %8 = arith.subf %0, %7 : vector<32x64xf32>
    %9 = arith.mulf %8, %8 : vector<32x64xf32>
    %cst_6 = arith.constant dense<0.000000e+00> : vector<32xf32>
    %10 = vector.multi_reduction <add>, %9, %cst_6 [1] : vector<32x64xf32> to vector<32xf32>
    %11 = vector.shape_cast %10 : vector<32xf32> to vector<32x1xf32>
    %cst_7 = arith.constant 6.400000e+01 : f32
    %12 = vector.broadcast %cst_7 : f32 to vector<32x1xf32>
    %13 = arith.divf %11, %12 : vector<32x1xf32>
    %14 = vector.broadcast %6 : vector<32x1xf32> to vector<32x64xf32>
    %15 = arith.subf %0, %14 : vector<32x64xf32>
    %cst_8 = arith.constant 9.99999974E-6 : f32
    %16 = vector.broadcast %cst_8 : f32 to vector<32x1xf32>
    %17 = arith.addf %13, %16 : vector<32x1xf32>
    %18 = math.rsqrt %17 : vector<32x1xf32>
    %19 = vector.broadcast %18 : vector<32x1xf32> to vector<32x64xf32>
    %20 = arith.mulf %15, %19 : vector<32x64xf32>
    %21 = vector.broadcast %1 : vector<1x64xf32> to vector<32x64xf32>
    %22 = arith.mulf %20, %21 : vector<32x64xf32>
    %23 = vector.broadcast %2 : vector<1x64xf32> to vector<32x64xf32>
    %24 = arith.addf %22, %23 : vector<32x64xf32>
    %25 = arith.truncf %24 : vector<32x64xf32> to vector<32x64xbf16>
    %c0_9 = arith.constant 0 : index
    %c0_10 = arith.constant 0 : index
    %26 = vector.load %arg4[%c0_9, %c0_10] : memref<64x64xbf16, #tpu.memory_space<vmem>>, vector<64x64xbf16>
    %cst_11 = arith.constant dense<0.000000e+00> : vector<32x64xf32>
    %27 = tpu.matmul %25, %26, %cst_11 {dimension_numbers = #tpu.dot_dimension_numbers<[1], [0], [0], [1], [0, 0, 1, 1], [], []>} : vector<32x64xbf16>, vector<64x64xbf16>, vector<32x64xf32> -> vector<32x64xf32>
    %c0_12 = arith.constant 0 : index
    %c0_13 = arith.constant 0 : index
    %28 = vector.load %arg7[%c0_12, %c0_13] : memref<1x64xf32, #tpu.memory_space<vmem>>, vector<1x64xf32>
    %29 = vector.broadcast %28 : vector<1x64xf32> to vector<32x64xf32>
    %30 = arith.addf %27, %29 : vector<32x64xf32>
    %31 = arith.truncf %30 : vector<32x64xf32> to vector<32x64xbf16>
    %c0_14 = arith.constant 0 : index
    %c0_15 = arith.constant 0 : index
    %32 = vector.load %arg10[%c0_14, %c0_15] : memref<32x64xbf16, #tpu.memory_space<vmem>>, vector<32x64xbf16>
    tpu.vector_store %arg10[%c0_14, %c0_15], %31 {strides = array<i32>} : memref<32x64xbf16, #tpu.memory_space<vmem>>, vector<32x64xbf16>,
    %c0_16 = arith.constant 0 : index
    %c0_17 = arith.constant 0 : index
    %33 = vector.load %arg5[%c0_16, %c0_17] : memref<64x64xbf16, #tpu.memory_space<vmem>>, vector<64x64xbf16>
    %cst_18 = arith.constant dense<0.000000e+00> : vector<32x64xf32>
    %34 = tpu.matmul %25, %33, %cst_18 {dimension_numbers = #tpu.dot_dimension_numbers<[1], [0], [0], [1], [0, 0, 1, 1], [], []>} : vector<32x64xbf16>, vector<64x64xbf16>, vector<32x64xf32> -> vector<32x64xf32>
    %c0_19 = arith.constant 0 : index
    %c0_20 = arith.constant 0 : index
    %35 = vector.load %arg8[%c0_19, %c0_20] : memref<1x64xf32, #tpu.memory_space<vmem>>, vector<1x64xf32>
    %36 = vector.broadcast %35 : vector<1x64xf32> to vector<32x64xf32>
    %37 = arith.addf %34, %36 : vector<32x64xf32>
    %38 = arith.truncf %37 : vector<32x64xf32> to vector<32x64xbf16>
    %c0_21 = arith.constant 0 : index
    %c0_22 = arith.constant 0 : index
    %39 = vector.load %arg11[%c0_21, %c0_22] : memref<32x64xbf16, #tpu.memory_space<vmem>>, vector<32x64xbf16>
    tpu.vector_store %arg11[%c0_21, %c0_22], %38 {strides = array<i32>} : memref<32x64xbf16, #tpu.memory_space<vmem>>, vector<32x64xbf16>,
    %c0_23 = arith.constant 0 : index
    %c0_24 = arith.constant 0 : index
    %40 = vector.load %arg6[%c0_23, %c0_24] : memref<64x64xbf16, #tpu.memory_space<vmem>>, vector<64x64xbf16>
    %cst_25 = arith.constant dense<0.000000e+00> : vector<32x64xf32>
    %41 = tpu.matmul %25, %40, %cst_25 {dimension_numbers = #tpu.dot_dimension_numbers<[1], [0], [0], [1], [0, 0, 1, 1], [], []>} : vector<32x64xbf16>, vector<64x64xbf16>, vector<32x64xf32> -> vector<32x64xf32>
    %c0_26 = arith.constant 0 : index
    %c0_27 = arith.constant 0 : index
    %42 = vector.load %arg9[%c0_26, %c0_27] : memref<1x64xf32, #tpu.memory_space<vmem>>, vector<1x64xf32>
    %43 = vector.broadcast %42 : vector<1x64xf32> to vector<32x64xf32>
    %44 = arith.addf %41, %43 : vector<32x64xf32>
    %45 = arith.truncf %44 : vector<32x64xf32> to vector<32x64xbf16>
    %c0_28 = arith.constant 0 : index
    %c0_29 = arith.constant 0 : index
    %46 = vector.load %arg12[%c0_28, %c0_29] : memref<32x64xbf16, #tpu.memory_space<vmem>>, vector<32x64xbf16>
    tpu.vector_store %arg12[%c0_28, %c0_29], %45 {strides = array<i32>} : memref<32x64xbf16, #tpu.memory_space<vmem>>, vector<32x64xbf16>,
    return
  }
  func.func @transform_0(%arg0: i32) -> (i32, i32) {
    %c0_i32 = arith.constant 0 : i32
    %c0_i32_0 = arith.constant 0 : i32
    return %arg0, %c0_i32 : i32, i32
  }
  func.func @transform_1(%arg0: i32) -> (i32, i32) {
    %c0_i32 = arith.constant 0 : i32
    %c0_i32_0 = arith.constant 0 : i32
    %c0_i32_1 = arith.constant 0 : i32
    return %c0_i32, %c0_i32_0 : i32, i32
  }
  func.func @transform_2(%arg0: i32) -> (i32, i32) {
    %c0_i32 = arith.constant 0 : i32
    %c0_i32_0 = arith.constant 0 : i32
    %c0_i32_1 = arith.constant 0 : i32
    return %c0_i32, %c0_i32_0 : i32, i32
  }
  func.func @transform_3(%arg0: i32) -> (i32, i32) {
    %c0_i32 = arith.constant 0 : i32
    %c0_i32_0 = arith.constant 0 : i32
    %c0_i32_1 = arith.constant 0 : i32
    return %c0_i32, %c0_i32_0 : i32, i32
  }
  func.func @transform_4(%arg0: i32) -> (i32, i32) {
    %c0_i32 = arith.constant 0 : i32
    %c0_i32_0 = arith.constant 0 : i32
    %c0_i32_1 = arith.constant 0 : i32
    return %c0_i32, %c0_i32_0 : i32, i32
  }
  func.func @transform_5(%arg0: i32) -> (i32, i32) {
    %c0_i32 = arith.constant 0 : i32
    %c0_i32_0 = arith.constant 0 : i32
    %c0_i32_1 = arith.constant 0 : i32
    return %c0_i32, %c0_i32_0 : i32, i32
  }
  func.func @transform_6(%arg0: i32) -> (i32, i32) {
    %c0_i32 = arith.constant 0 : i32
    %c0_i32_0 = arith.constant 0 : i32
    %c0_i32_1 = arith.constant 0 : i32
    return %c0_i32, %c0_i32_0 : i32, i32
  }
  func.func @transform_7(%arg0: i32) -> (i32, i32) {
    %c0_i32 = arith.constant 0 : i32
    %c0_i32_0 = arith.constant 0 : i32
    %c0_i32_1 = arith.constant 0 : i32
    return %c0_i32, %c0_i32_0 : i32, i32
  }
  func.func @transform_8(%arg0: i32) -> (i32, i32) {
    %c0_i32 = arith.constant 0 : i32
    %c0_i32_0 = arith.constant 0 : i32
    %c0_i32_1 = arith.constant 0 : i32
    return %c0_i32, %c0_i32_0 : i32, i32
  }
  func.func @transform_9(%arg0: i32) -> (i32, i32) {
    %c0_i32 = arith.constant 0 : i32
    %c0_i32_0 = arith.constant 0 : i32
    return %arg0, %c0_i32 : i32, i32
  }
  func.func @transform_10(%arg0: i32) -> (i32, i32) {
    %c0_i32 = arith.constant 0 : i32
    %c0_i32_0 = arith.constant 0 : i32
    return %arg0, %c0_i32 : i32, i32
  }
  func.func @transform_11(%arg0: i32) -> (i32, i32) {
    %c0_i32 = arith.constant 0 : i32
    %c0_i32_0 = arith.constant 0 : i32
    return %arg0, %c0_i32 : i32, i32
  }
}

module attributes {stable_mosaic.version = 11 : i64} {
  func.func @attn_kernel(%arg0: i32, %arg1: memref<1x16x64xbf16, #tpu.memory_space<vmem>>, %arg2: memref<1x16x64xbf16, #tpu.memory_space<vmem>>, %arg3: memref<1x16x64xbf16, #tpu.memory_space<vmem>>, %arg4: memref<1x16x64xbf16, #tpu.memory_space<vmem>>) attributes {dimension_semantics = [#tpu.dimension_semantics<parallel>], iteration_bounds = array<i64: 2>, scalar_prefetch = 0 : i64, scratch_operands = 0 : i64, tpu.core_type = #tpu.core_type<tc>, window_params = [{transform_indices = @transform_0, window_bounds = array<i64: 1, 16, 64>}, {transform_indices = @transform_1, window_bounds = array<i64: 1, 16, 64>}, {transform_indices = @transform_2, window_bounds = array<i64: 1, 16, 64>}, {transform_indices = @transform_3, window_bounds = array<i64: 1, 16, 64>}]} {
    %c0 = arith.constant 0 : index
    %c0_0 = arith.constant 0 : index
    %c0_1 = arith.constant 0 : index
    %0 = vector.load %arg1[%c0, %c0_0, %c0_1] : memref<1x16x64xbf16, #tpu.memory_space<vmem>>, vector<1x16x64xbf16>
    %1 = vector.shape_cast %0 : vector<1x16x64xbf16> to vector<16x64xbf16>
    %2 = vector.shape_cast %1 : vector<16x64xbf16> to vector<16x4x16xbf16>
    %3 = tpu.transpose %2, [1, 0, 2] : vector<16x4x16xbf16> -> vector<4x16x16xbf16>
    %c0_2 = arith.constant 0 : index
    %c0_3 = arith.constant 0 : index
    %c0_4 = arith.constant 0 : index
    %4 = vector.load %arg2[%c0_2, %c0_3, %c0_4] : memref<1x16x64xbf16, #tpu.memory_space<vmem>>, vector<1x16x64xbf16>
    %5 = vector.shape_cast %4 : vector<1x16x64xbf16> to vector<16x64xbf16>
    %6 = vector.shape_cast %5 : vector<16x64xbf16> to vector<16x4x16xbf16>
    %7 = tpu.transpose %6, [1, 0, 2] : vector<16x4x16xbf16> -> vector<4x16x16xbf16>
    %c0_5 = arith.constant 0 : index
    %c0_6 = arith.constant 0 : index
    %c0_7 = arith.constant 0 : index
    %8 = vector.load %arg3[%c0_5, %c0_6, %c0_7] : memref<1x16x64xbf16, #tpu.memory_space<vmem>>, vector<1x16x64xbf16>
    %9 = vector.shape_cast %8 : vector<1x16x64xbf16> to vector<16x64xbf16>
    %10 = vector.shape_cast %9 : vector<16x64xbf16> to vector<16x4x16xbf16>
    %11 = tpu.transpose %10, [1, 0, 2] : vector<16x4x16xbf16> -> vector<4x16x16xbf16>
    "tpu.trace_start"() <{level = 10 : i32, message = "hqd,hkd->hqk"}> : () -> ()
    %cst = arith.constant dense<0.000000e+00> : vector<4x16x16xf32>
    %12 = tpu.matmul %3, %7, %cst {dimension_numbers = #tpu.dot_dimension_numbers<[2], [2], [1], [1], [0, 0, 0, 1, 1, 1], [0], [0]>} : vector<4x16x16xbf16>, vector<4x16x16xbf16>, vector<4x16x16xf32> -> vector<4x16x16xf32>
    "tpu.trace_stop"() : () -> ()
    %cst_8 = arith.constant dense<0xFF800000> : vector<4x16xf32>
    %13 = vector.multi_reduction <maximumf>, %12, %cst_8 [2] : vector<4x16x16xf32> to vector<4x16xf32>
    %14 = vector.shape_cast %13 : vector<4x16xf32> to vector<4x16x1xf32>
    %15 = vector.broadcast %14 : vector<4x16x1xf32> to vector<4x16x16xf32>
    %16 = arith.subf %12, %15 : vector<4x16x16xf32>
    %17 = math.exp %16 : vector<4x16x16xf32>
    %cst_9 = arith.constant dense<0.000000e+00> : vector<4x16xf32>
    %18 = vector.multi_reduction <add>, %17, %cst_9 [2] : vector<4x16x16xf32> to vector<4x16xf32>
    %19 = vector.shape_cast %18 : vector<4x16xf32> to vector<4x16x1xf32>
    %20 = tpu.reciprocal %19 {approx = true} : vector<4x16x1xf32> -> vector<4x16x1xf32>
    %21 = arith.truncf %17 : vector<4x16x16xf32> to vector<4x16x16xbf16>
    "tpu.trace_start"() <{level = 10 : i32, message = "hqk,hkd->hqd"}> : () -> ()
    %cst_10 = arith.constant dense<0.000000e+00> : vector<4x16x16xf32>
    %22 = tpu.matmul %21, %11, %cst_10 {dimension_numbers = #tpu.dot_dimension_numbers<[2], [1], [1], [2], [0, 0, 0, 1, 1, 2], [0], [0]>} : vector<4x16x16xbf16>, vector<4x16x16xbf16>, vector<4x16x16xf32> -> vector<4x16x16xf32>
    "tpu.trace_stop"() : () -> ()
    %23 = vector.broadcast %20 : vector<4x16x1xf32> to vector<4x16x16xf32>
    %24 = arith.mulf %22, %23 : vector<4x16x16xf32>
    %25 = tpu.transpose %24, [1, 0, 2] : vector<4x16x16xf32> -> vector<16x4x16xf32>
    %26 = vector.shape_cast %25 : vector<16x4x16xf32> to vector<16x64xf32>
    %27 = arith.truncf %26 : vector<16x64xf32> to vector<16x64xbf16>
    %c0_11 = arith.constant 0 : index
    %c0_12 = arith.constant 0 : index
    %c0_13 = arith.constant 0 : index
    %28 = vector.load %arg4[%c0_11, %c0_12, %c0_13] : memref<1x16x64xbf16, #tpu.memory_space<vmem>>, vector<1x16x64xbf16>
    %29 = vector.shape_cast %28 : vector<1x16x64xbf16> to vector<16x64xbf16>
    %30 = vector.shape_cast %27 : vector<16x64xbf16> to vector<1x16x64xbf16>
    tpu.vector_store %arg4[%c0_11, %c0_12, %c0_13], %30 {strides = array<i32>} : memref<1x16x64xbf16, #tpu.memory_space<vmem>>, vector<1x16x64xbf16>,
    return
  }
  func.func @transform_0(%arg0: i32) -> (i32, i32, i32) {
    %c0_i32 = arith.constant 0 : i32
    %c0_i32_0 = arith.constant 0 : i32
    %c0_i32_1 = arith.constant 0 : i32
    return %arg0, %c0_i32, %c0_i32_0 : i32, i32, i32
  }
  func.func @transform_1(%arg0: i32) -> (i32, i32, i32) {
    %c0_i32 = arith.constant 0 : i32
    %c0_i32_0 = arith.constant 0 : i32
    %c0_i32_1 = arith.constant 0 : i32
    return %arg0, %c0_i32, %c0_i32_0 : i32, i32, i32
  }
  func.func @transform_2(%arg0: i32) -> (i32, i32, i32) {
    %c0_i32 = arith.constant 0 : i32
    %c0_i32_0 = arith.constant 0 : i32
    %c0_i32_1 = arith.constant 0 : i32
    return %arg0, %c0_i32, %c0_i32_0 : i32, i32, i32
  }
  func.func @transform_3(%arg0: i32) -> (i32, i32, i32) {
    %c0_i32 = arith.constant 0 : i32
    %c0_i32_0 = arith.constant 0 : i32
    %c0_i32_1 = arith.constant 0 : i32
    return %arg0, %c0_i32, %c0_i32_0 : i32, i32, i32
  }
}

module attributes {stable_mosaic.version = 11 : i64} {
  func.func @proj_ffn_kernel(%arg0: i32, %arg1: memref<32x64xbf16, #tpu.memory_space<vmem>>, %arg2: memref<32x64xf32, #tpu.memory_space<vmem>>, %arg3: memref<64x64xbf16, #tpu.memory_space<vmem>>, %arg4: memref<1x64xf32, #tpu.memory_space<vmem>>, %arg5: memref<1x64xf32, #tpu.memory_space<vmem>>, %arg6: memref<1x64xf32, #tpu.memory_space<vmem>>, %arg7: memref<64x128xbf16, #tpu.memory_space<vmem>>, %arg8: memref<1x128xf32, #tpu.memory_space<vmem>>, %arg9: memref<128x64xbf16, #tpu.memory_space<vmem>>, %arg10: memref<1x64xf32, #tpu.memory_space<vmem>>, %arg11: memref<32x64xf32, #tpu.memory_space<vmem>>) attributes {dimension_semantics = [#tpu.dimension_semantics<parallel>], iteration_bounds = array<i64: 1>, scalar_prefetch = 0 : i64, scratch_operands = 0 : i64, tpu.core_type = #tpu.core_type<tc>, window_params = [{transform_indices = @transform_0, window_bounds = array<i64: 32, 64>}, {transform_indices = @transform_1, window_bounds = array<i64: 32, 64>}, {pipeline_mode = #tpu.pipeline_mode<synchronous>, transform_indices = @transform_2, window_bounds = array<i64: 64, 64>}, {pipeline_mode = #tpu.pipeline_mode<synchronous>, transform_indices = @transform_3, window_bounds = array<i64: 1, 64>}, {pipeline_mode = #tpu.pipeline_mode<synchronous>, transform_indices = @transform_4, window_bounds = array<i64: 1, 64>}, {pipeline_mode = #tpu.pipeline_mode<synchronous>, transform_indices = @transform_5, window_bounds = array<i64: 1, 64>}, {pipeline_mode = #tpu.pipeline_mode<synchronous>, transform_indices = @transform_6, window_bounds = array<i64: 64, 128>}, {pipeline_mode = #tpu.pipeline_mode<synchronous>, transform_indices = @transform_7, window_bounds = array<i64: 1, 128>}, {pipeline_mode = #tpu.pipeline_mode<synchronous>, transform_indices = @transform_8, window_bounds = array<i64: 128, 64>}, {pipeline_mode = #tpu.pipeline_mode<synchronous>, transform_indices = @transform_9, window_bounds = array<i64: 1, 64>}, {transform_indices = @transform_10, window_bounds = array<i64: 32, 64>}]} {
    %c0 = arith.constant 0 : index
    %c0_0 = arith.constant 0 : index
    %0 = vector.load %arg1[%c0, %c0_0] : memref<32x64xbf16, #tpu.memory_space<vmem>>, vector<32x64xbf16>
    %c0_1 = arith.constant 0 : index
    %c0_2 = arith.constant 0 : index
    %1 = vector.load %arg3[%c0_1, %c0_2] : memref<64x64xbf16, #tpu.memory_space<vmem>>, vector<64x64xbf16>
    %cst = arith.constant dense<0.000000e+00> : vector<32x64xf32>
    %2 = tpu.matmul %0, %1, %cst {dimension_numbers = #tpu.dot_dimension_numbers<[1], [0], [0], [1], [0, 0, 1, 1], [], []>} : vector<32x64xbf16>, vector<64x64xbf16>, vector<32x64xf32> -> vector<32x64xf32>
    %c0_3 = arith.constant 0 : index
    %c0_4 = arith.constant 0 : index
    %3 = vector.load %arg4[%c0_3, %c0_4] : memref<1x64xf32, #tpu.memory_space<vmem>>, vector<1x64xf32>
    %4 = vector.broadcast %3 : vector<1x64xf32> to vector<32x64xf32>
    %5 = arith.addf %2, %4 : vector<32x64xf32>
    %c0_5 = arith.constant 0 : index
    %c0_6 = arith.constant 0 : index
    %6 = vector.load %arg2[%c0_5, %c0_6] : memref<32x64xf32, #tpu.memory_space<vmem>>, vector<32x64xf32>
    %7 = arith.addf %6, %5 : vector<32x64xf32>
    %c0_7 = arith.constant 0 : index
    %c0_8 = arith.constant 0 : index
    %8 = vector.load %arg5[%c0_7, %c0_8] : memref<1x64xf32, #tpu.memory_space<vmem>>, vector<1x64xf32>
    %c0_9 = arith.constant 0 : index
    %c0_10 = arith.constant 0 : index
    %9 = vector.load %arg6[%c0_9, %c0_10] : memref<1x64xf32, #tpu.memory_space<vmem>>, vector<1x64xf32>
    %cst_11 = arith.constant dense<0.000000e+00> : vector<32xf32>
    %10 = vector.multi_reduction <add>, %7, %cst_11 [1] : vector<32x64xf32> to vector<32xf32>
    %11 = vector.shape_cast %10 : vector<32xf32> to vector<32x1xf32>
    %cst_12 = arith.constant 6.400000e+01 : f32
    %12 = vector.broadcast %cst_12 : f32 to vector<32x1xf32>
    %13 = arith.divf %11, %12 : vector<32x1xf32>
    %14 = vector.broadcast %13 : vector<32x1xf32> to vector<32x64xf32>
    %15 = arith.subf %7, %14 : vector<32x64xf32>
    %16 = arith.mulf %15, %15 : vector<32x64xf32>
    %cst_13 = arith.constant dense<0.000000e+00> : vector<32xf32>
    %17 = vector.multi_reduction <add>, %16, %cst_13 [1] : vector<32x64xf32> to vector<32xf32>
    %18 = vector.shape_cast %17 : vector<32xf32> to vector<32x1xf32>
    %cst_14 = arith.constant 6.400000e+01 : f32
    %19 = vector.broadcast %cst_14 : f32 to vector<32x1xf32>
    %20 = arith.divf %18, %19 : vector<32x1xf32>
    %21 = vector.broadcast %13 : vector<32x1xf32> to vector<32x64xf32>
    %22 = arith.subf %7, %21 : vector<32x64xf32>
    %cst_15 = arith.constant 9.99999974E-6 : f32
    %23 = vector.broadcast %cst_15 : f32 to vector<32x1xf32>
    %24 = arith.addf %20, %23 : vector<32x1xf32>
    %25 = math.rsqrt %24 : vector<32x1xf32>
    %26 = vector.broadcast %25 : vector<32x1xf32> to vector<32x64xf32>
    %27 = arith.mulf %22, %26 : vector<32x64xf32>
    %28 = vector.broadcast %8 : vector<1x64xf32> to vector<32x64xf32>
    %29 = arith.mulf %27, %28 : vector<32x64xf32>
    %30 = vector.broadcast %9 : vector<1x64xf32> to vector<32x64xf32>
    %31 = arith.addf %29, %30 : vector<32x64xf32>
    %32 = arith.truncf %31 : vector<32x64xf32> to vector<32x64xbf16>
    %c0_16 = arith.constant 0 : index
    %c0_17 = arith.constant 0 : index
    %33 = vector.load %arg7[%c0_16, %c0_17] : memref<64x128xbf16, #tpu.memory_space<vmem>>, vector<64x128xbf16>
    %cst_18 = arith.constant dense<0.000000e+00> : vector<32x128xf32>
    %34 = tpu.matmul %32, %33, %cst_18 {dimension_numbers = #tpu.dot_dimension_numbers<[1], [0], [0], [1], [0, 0, 1, 1], [], []>} : vector<32x64xbf16>, vector<64x128xbf16>, vector<32x128xf32> -> vector<32x128xf32>
    %c0_19 = arith.constant 0 : index
    %c0_20 = arith.constant 0 : index
    %35 = vector.load %arg8[%c0_19, %c0_20] : memref<1x128xf32, #tpu.memory_space<vmem>>, vector<1x128xf32>
    %36 = vector.broadcast %35 : vector<1x128xf32> to vector<32x128xf32>
    %37 = arith.addf %34, %36 : vector<32x128xf32>
    %cst_21 = arith.constant 5.000000e-01 : f32
    %38 = vector.broadcast %cst_21 : f32 to vector<32x128xf32>
    %39 = arith.mulf %38, %37 : vector<32x128xf32>
    %cst_22 = arith.constant 0.707106769 : f32
    %40 = vector.broadcast %cst_22 : f32 to vector<32x128xf32>
    %41 = arith.mulf %37, %40 : vector<32x128xf32>
    %42 = math.erf %41 : vector<32x128xf32>
    %cst_23 = arith.constant 1.000000e+00 : f32
    %43 = vector.broadcast %cst_23 : f32 to vector<32x128xf32>
    %44 = arith.addf %43, %42 : vector<32x128xf32>
    %45 = arith.mulf %39, %44 : vector<32x128xf32>
    %46 = arith.truncf %45 : vector<32x128xf32> to vector<32x128xbf16>
    %c0_24 = arith.constant 0 : index
    %c0_25 = arith.constant 0 : index
    %47 = vector.load %arg9[%c0_24, %c0_25] : memref<128x64xbf16, #tpu.memory_space<vmem>>, vector<128x64xbf16>
    %cst_26 = arith.constant dense<0.000000e+00> : vector<32x64xf32>
    %48 = tpu.matmul %46, %47, %cst_26 {dimension_numbers = #tpu.dot_dimension_numbers<[1], [0], [0], [1], [0, 0, 1, 1], [], []>} : vector<32x128xbf16>, vector<128x64xbf16>, vector<32x64xf32> -> vector<32x64xf32>
    %c0_27 = arith.constant 0 : index
    %c0_28 = arith.constant 0 : index
    %49 = vector.load %arg10[%c0_27, %c0_28] : memref<1x64xf32, #tpu.memory_space<vmem>>, vector<1x64xf32>
    %50 = vector.broadcast %49 : vector<1x64xf32> to vector<32x64xf32>
    %51 = arith.addf %48, %50 : vector<32x64xf32>
    %52 = arith.addf %7, %51 : vector<32x64xf32>
    %c0_29 = arith.constant 0 : index
    %c0_30 = arith.constant 0 : index
    %53 = vector.load %arg11[%c0_29, %c0_30] : memref<32x64xf32, #tpu.memory_space<vmem>>, vector<32x64xf32>
    tpu.vector_store %arg11[%c0_29, %c0_30], %52 {strides = array<i32>} : memref<32x64xf32, #tpu.memory_space<vmem>>, vector<32x64xf32>,
    return
  }
  func.func @transform_0(%arg0: i32) -> (i32, i32) {
    %c0_i32 = arith.constant 0 : i32
    %c0_i32_0 = arith.constant 0 : i32
    return %arg0, %c0_i32 : i32, i32
  }
  func.func @transform_1(%arg0: i32) -> (i32, i32) {
    %c0_i32 = arith.constant 0 : i32
    %c0_i32_0 = arith.constant 0 : i32
    return %arg0, %c0_i32 : i32, i32
  }
  func.func @transform_2(%arg0: i32) -> (i32, i32) {
    %c0_i32 = arith.constant 0 : i32
    %c0_i32_0 = arith.constant 0 : i32
    %c0_i32_1 = arith.constant 0 : i32
    return %c0_i32, %c0_i32_0 : i32, i32
  }
  func.func @transform_3(%arg0: i32) -> (i32, i32) {
    %c0_i32 = arith.constant 0 : i32
    %c0_i32_0 = arith.constant 0 : i32
    %c0_i32_1 = arith.constant 0 : i32
    return %c0_i32, %c0_i32_0 : i32, i32
  }
  func.func @transform_4(%arg0: i32) -> (i32, i32) {
    %c0_i32 = arith.constant 0 : i32
    %c0_i32_0 = arith.constant 0 : i32
    %c0_i32_1 = arith.constant 0 : i32
    return %c0_i32, %c0_i32_0 : i32, i32
  }
  func.func @transform_5(%arg0: i32) -> (i32, i32) {
    %c0_i32 = arith.constant 0 : i32
    %c0_i32_0 = arith.constant 0 : i32
    %c0_i32_1 = arith.constant 0 : i32
    return %c0_i32, %c0_i32_0 : i32, i32
  }
  func.func @transform_6(%arg0: i32) -> (i32, i32) {
    %c0_i32 = arith.constant 0 : i32
    %c0_i32_0 = arith.constant 0 : i32
    %c0_i32_1 = arith.constant 0 : i32
    return %c0_i32, %c0_i32_0 : i32, i32
  }
  func.func @transform_7(%arg0: i32) -> (i32, i32) {
    %c0_i32 = arith.constant 0 : i32
    %c0_i32_0 = arith.constant 0 : i32
    %c0_i32_1 = arith.constant 0 : i32
    return %c0_i32, %c0_i32_0 : i32, i32
  }
  func.func @transform_8(%arg0: i32) -> (i32, i32) {
    %c0_i32 = arith.constant 0 : i32
    %c0_i32_0 = arith.constant 0 : i32
    %c0_i32_1 = arith.constant 0 : i32
    return %c0_i32, %c0_i32_0 : i32, i32
  }
  func.func @transform_9(%arg0: i32) -> (i32, i32) {
    %c0_i32 = arith.constant 0 : i32
    %c0_i32_0 = arith.constant 0 : i32
    %c0_i32_1 = arith.constant 0 : i32
    return %c0_i32, %c0_i32_0 : i32, i32
  }
  func.func @transform_10(%arg0: i32) -> (i32, i32) {
    %c0_i32 = arith.constant 0 : i32
    %c0_i32_0 = arith.constant 0 : i32
    return %arg0, %c0_i32 : i32, i32
  }
}

</mosaic_0001>

<bundles_post_ra>
// kernel: transformer_block_forward.3
= control target key start
LH: loop header
LB: loop body
LE: loop exit
PB: predicated region body
PF: predicated region fallthrough
CT: control target
= control target key end

     0   :  { %vm42_vm0 = vcmask 523264   ;;  %vm228_vm1 = vcmask 519168   ;;  %s787_s0 = inlined_call_operand.vmem [shape: f32[32,64], index: 0, kind: input, shape index: {}]   ;;  %s788_s3 = inlined_call_operand.vmem [shape: bf16[64,64], index: 3, kind: input, shape index: {}]   ;;  %s789_s4 = inlined_call_operand.vmem [shape: bf16[64,64], index: 4, kind: input, shape index: {}]   ;;  %s790_s5 = inlined_call_operand.vmem [shape: bf16[64,64], index: 5, kind: input, shape index: {}]   ;;  %s791_s1 = inlined_call_operand.vmem [shape: f32[1,64], index: 1, kind: input, shape index: {}]   ;;  %s792_s2 = inlined_call_operand.vmem [shape: f32[1,64], index: 2, kind: input, shape index: {}]   ;;  %s793_s6 = inlined_call_operand.vmem [shape: f32[1,64], index: 6, kind: input, shape index: {}]   ;;  %s794_s7 = inlined_call_operand.vmem [shape: f32[1,64], index: 7, kind: input, shape index: {}]   ;;  %s795_s9 = inlined_call_operand.vmem [shape: bf16[32,64], index: 9, kind: output, shape index: {0}]   ;;  %s796_s10 = inlined_call_operand.vmem [shape: bf16[32,64], index: 10, kind: output, shape index: {1}]   ;;  %s797_s8 = inlined_call_operand.vmem [shape: f32[1,64], index: 8, kind: input, shape index: {}]   ;;  %s798_s11 = inlined_call_operand.vmem [shape: bf16[32,64], index: 11, kind: output, shape index: {2}]  }
   0x1   :  { %v36_v0 = vld [vmem:[%s787_s0] sm:$0xff]  ;;  %v38_v1 = vld [vmem:[%s787_s0 + $0x10] sm:$0xff]  ;;  %v37_v2 = vld [vmem:[%s787_s0 + $0x8] sm:$0xff] }
   0x2   :  { %v43_v3 = vsel %vm42_vm0, %v36_v0, 0.0  ;;  %v49_v4 = vsel %vm42_vm0, %v38_v1, 0.0  ;;  %v39_v5 = vld [vmem:[%s787_s0 + $0x18] sm:$0xff]  ;;  %v46_v6 = vsel %vm42_vm0, %v37_v2, 0.0  ;;  %v564_v30 = vld [vmem:[%s788_s3 + $0x10] sm:$0xff]   ;;  %v566_v32 = vld [vmem:[%s788_s3 + $0x8] sm:$0xff]  }
   0x3   :  { %44 = vadd.xlane.f32.xlu0 %v43_v3  ;;  %50 = vadd.xlane.f32.xlu1 %v49_v4  ;;  %v52_v7 = vsel %vm42_vm0, %v39_v5, 0.0  ;;  %v562_v28 = vld [vmem:[%s788_s3 + $0x18] sm:$0xff]   ;;  %v565_v31 = vld [vmem:[%s789_s4 + $0x10] sm:$0xff]   ;;  %v567_v33 = vld [vmem:[%s789_s4 + $0x8] sm:$0xff]  }
   0x4   :  { %v563_v29 = vld [vmem:[%s789_s4 + $0x18] sm:$0xff]   ;;  %526 = vmatprep.subr.bf16.mxu0 %v562_v28  ;;  %v568_v34 = vld [vmem:[%s788_s3] sm:$0xff]  }
   0x5   :  { %527 = vmatpush3.bf16.msra.mxu0 %v562_v28  ;;  %538 = vmatprep.subr.bf16.mxu1 %v563_v29  ;;  %v569_v35 = vld [vmem:[%s789_s4] sm:$0xff]   ;;  %v570_v36 = vld [vmem:[%s790_s5 + $0x18] sm:$0xff]  }
   0x6   :  { %539 = vmatpush3.bf16.msra.mxu1 %v563_v29  ;;  %528 = vmatprep.subr.bf16.mxu0 %v564_v30  ;;  %v461_v51 = vld [vmem:[%s791_s1] ss:$0 sm:$0xff] }
   0x7   :  { %47 = vadd.xlane.f32.xlu0 %v46_v6  ;;  %53 = vadd.xlane.f32.xlu1 %v52_v7  ;;  %v462_v56 = vld [vmem:[%s792_s2] ss:$0 sm:$0xff]  ;;  %v572_v6 = vld [vmem:[%s790_s5 + $0x8] sm:$0xff]  }
   0x8   :  { %540 = vmatprep.subr.bf16.mxu1 %v565_v31  ;;  %v573_v7 = vld [vmem:[%s790_s5] sm:$0xff]  }
   0x9   :  { %529 = vmatpush3.bf16.msra.mxu0 %v564_v30 }
   0xa   :  { %541 = vmatpush3.bf16.msra.mxu1 %v565_v31  ;;  %530 = vmatprep.subr.bf16.mxu0 %v566_v32 }
   0xb   :  { %542 = vmatprep.subr.bf16.mxu1 %v567_v33 }
   0xd   :  { %531 = vmatpush3.bf16.msra.mxu0 %v566_v32 }
   0xe   :  { %543 = vmatpush3.bf16.msra.mxu1 %v567_v33  ;;  %532 = vmatprep.subr.bf16.mxu0 %v568_v34 }
   0xf   :  { %544 = vmatprep.subr.bf16.mxu1 %v569_v35 }
  0x11   :  { %533 = vmatpush3.bf16.msra.mxu0 %v568_v34  ;;  %v485_v34 = vld [vmem:[%s797_s8] ss:$0 sm:$0xff] }
  0x12   :  { %545 = vmatpush3.bf16.msra.mxu1 %v569_v35  ;;  %550 = vmatprep.subr.bf16.mxu0 %v570_v36 }
  0x8c   :  { %v45_v8 = vpop.xlane.xlu0 %44  ;;  %v51_v9 = vpop.xlane.xlu1 %50 }
  0x8d   :  { %v56_v10 = vmul.f32 0.015625, %v45_v8  ;;  %v58_v11 = vmul.f32 0.015625, %v51_v9  ;;  %v463_v8 = vld [vmem:[%s793_s6] ss:$0 sm:$0xff] }
  0x8e   :  { %v474_v9 = vld [vmem:[%s794_s7] ss:$0 sm:$0xff] }
  0x8f   :  { %v658_v12 = vsub.f32 %v36_v0, %v56_v10  ;;  %v660_v13 = vsub.f32 %v38_v1, %v58_v11 }
  0x90   :  { %v48_v14 = vpop.xlane.xlu0 %47  ;;  %v54_v15 = vpop.xlane.xlu1 %53 }
  0x91   :  { %v57_v16 = vmul.f32 0.015625, %v48_v14  ;;  %v59_v17 = vmul.f32 0.015625, %v54_v15  ;;  %v64_v18 = vmul.f32 %v658_v12, %v658_v12  ;;  %v66_v19 = vmul.f32 %v660_v13, %v660_v13 }
  0x93   :  { %v666_v20 = vsub.f32 %v37_v2, %v57_v16  ;;  %v668_v21 = vsub.f32 %v39_v5, %v59_v17  ;;  %v68_v22 = vsel %vm42_vm0, %v64_v18, 0.0  ;;  %v74_v23 = vsel %vm42_vm0, %v66_v19, 0.0  ;;  %v571_v5 = vld [vmem:[%s790_s5 + $0x10] sm:$0xff]  }
  0x94   :  { %69 = vadd.xlane.f32.xlu0 %v68_v22 }
  0x95   :  { %v65_v24 = vmul.f32 %v666_v20, %v666_v20  ;;  %v67_v25 = vmul.f32 %v668_v21, %v668_v21 }
  0x97   :  { %v71_v26 = vsel %vm42_vm0, %v65_v24, 0.0  ;;  %v77_v27 = vsel %vm42_vm0, %v67_v25, 0.0 }
  0x98   :  { %75 = vadd.xlane.f32.xlu0 %v74_v23  ;;  %72 = vadd.xlane.f32.xlu1 %v71_v26 }
  0x9c   :  { %78 = vadd.xlane.f32.xlu1 %v77_v27 }
 0x11d   :  { %v70_v37 = vpop.xlane.xlu0 %69 }
 0x11e   :  { %v80_v38 = vmul.f32 0.015625, %v70_v37 }
 0x120   :  { %v84_v39 = vadd.f32 1e-05, %v80_v38 }
 0x121   :  { %v73_v40 = vpop.xlane.xlu1 %72  ;;  %v76_v41 = vpop.xlane.xlu0 %75 }
 0x122   :  { %574 = vrsqrt.f32 %v84_v39  ;;  %v81_v42 = vmul.f32 0.015625, %v73_v40  ;;  %v82_v43 = vmul.f32 0.015625, %v76_v41 }
 0x124   :  { %v85_v44 = vadd.f32 1e-05, %v81_v42  ;;  %v86_v45 = vadd.f32 1e-05, %v82_v43 }
 0x125   :  { %v79_v46 = vpop.xlane.xlu1 %78 }
 0x126   :  { %576 = vrsqrt.f32 %v85_v44  ;;  %v83_v47 = vmul.f32 0.015625, %v79_v46 }
 0x127   :  { %578 = vrsqrt.f32 %v86_v45 }
 0x128   :  { %v87_v48 = vadd.f32 1e-05, %v83_v47 }
 0x12a   :  { %580 = vrsqrt.f32 %v87_v48 }
 0x12f   :  { %v575_v49 = vpop.eup %574 }
 0x130   :  { %v92_v50 = vmul.f32 %v575_v49, %v658_v12 }
 0x132   :  { %v102_v55 = vmul.f32 %v461_v51, %v92_v50 }
 0x133   :  { %v577_v52 = vpop.eup %576 }
 0x134   :  { %v579_v53 = vpop.eup %578  ;;  %v93_v54 = vmul.f32 %v577_v52, %v666_v20  ;;  %v112_v60 = vadd.f32 %v462_v56, %v102_v55 }
 0x135   :  { %v94_v57 = vmul.f32 %v579_v53, %v660_v13 }
 0x136   :  { %v103_v58 = vmul.f32 %v461_v51, %v93_v54 }
 0x137   :  { %v581_v59 = vpop.eup %580  ;;  %v104_v63 = vmul.f32 %v461_v51, %v94_v57 }
 0x138   :  { %v113_v61 = vadd.f32 %v462_v56, %v103_v58  ;;  %v95_v62 = vmul.f32 %v581_v59, %v668_v21 }
 0x139   :  { %v114_v2 = vadd.f32 %v462_v56, %v104_v63 }
 0x13a   :  { %v116_v0 = vpack.c.bf16 %v113_v61, %v112_v60  ;;  %v105_v1 = vmul.f32 %v461_v51, %v95_v62 }
 0x13c   :  { %534 = vmatprep.mubr.msk.bf16.mxu0 %vm42_vm0, %v116_v0  ;;  %546 = vmatprep.mubr.msk.bf16.mxu1 %vm42_vm0, %v116_v0  ;;  %v115_v3 = vadd.f32 %v462_v56, %v105_v1 }
 0x13e   :  { %v117_v4 = vpack.c.bf16 %v115_v3, %v114_v2 }
 0x140   :  { %535 = vmatmul.mubr.msk.bf16.vlgmr.msra.gmra.mxu0 %vm42_vm0, %v117_v4  ;;  %547 = vmatmul.mubr.msk.bf16.vlgmr.msra.gmra.mxu1 %vm42_vm0, %v117_v4 }
 0x141   :  { %551 = vmatpush3.bf16.msra.mxu0 %v570_v36  ;;  %558 = vmatprep.mubr.msk.bf16.mxu0 %vm42_vm0, %v116_v0 }
 0x142   :  { %552 = vmatprep.subr.bf16.mxu0 %v571_v5 }
 0x145   :  { %553 = vmatpush3.bf16.msra.mxu0 %v571_v5 }
 0x146   :  { %554 = vmatprep.subr.bf16.mxu0 %v572_v6 }
 0x149   :  { %555 = vmatpush3.bf16.msra.mxu0 %v572_v6 }
 0x14a   :  { %556 = vmatprep.subr.bf16.mxu0 %v573_v7 }
 0x14d   :  { %557 = vmatpush3.bf16.msra.mxu0 %v573_v7 }
 0x150   :  { %559 = vmatmul.mubr.msk.bf16.vlgmr.msra.gmra.mxu0 %vm42_vm0, %v117_v4 }
 0x200   :  { %v536_v10 = vpop.f32.mrf.mxu0  ;;  %v548_v11 = vpop.f32.mrf.mxu1 }
 0x201   :  { %v206_v12 = vadd.f32 %v536_v10, %v463_v8  ;;  %v315_v13 = vadd.f32 %v548_v11, %v474_v9 }
 0x202   :  { %v197_v14 = vpop.f32.mrf.mxu0  ;;  %v306_v15 = vpop.f32.mrf.mxu1 }
 0x203   :  { %v498_v16 = vpack.c.bf16 %v206_v12, %v206_v12  ;;  %v502_v17 = vpack.c.bf16 %v315_v13, %v315_v13  ;;  %v198_v18 = vadd.f32 %v463_v8, %v197_v14  ;;  %v307_v19 = vadd.f32 %v474_v9, %v306_v15 }
 0x204   :  { %v537_v20 = vpop.f32.mrf.mxu0  ;;  %v549_v21 = vpop.f32.mrf.mxu1 }
 0x205   :  { %231 = vst.msk [vmem:[%s795_s9 + $0x8] sm:$0xf] %vm228_vm1, %v498_v16  ;;  %339 = vst.msk [vmem:[%s796_s10 + $0x8] sm:$0xf] %vm228_vm1, %v502_v17  ;;  %v496_v22 = vpack.c.bf16 %v198_v18, %v198_v18  ;;  %v500_v23 = vpack.c.bf16 %v307_v19, %v307_v19  ;;  %v209_v24 = vadd.f32 %v537_v20, %v463_v8 }
 0x206   :  { %v318_v25 = vadd.f32 %v549_v21, %v474_v9  ;;  %v200_v26 = vpop.f32.mrf.mxu0  ;;  %v309_v27 = vpop.f32.mrf.mxu1 }
 0x207   :  { %229 = vst.msk [vmem:[%s795_s9] sm:$0xf] %vm228_vm1, %v496_v22  ;;  %337 = vst.msk [vmem:[%s796_s10] sm:$0xf] %vm228_vm1, %v500_v23  ;;  %v499_v28 = vpack.c.bf16 %v209_v24, %v209_v24  ;;  %v201_v30 = vadd.f32 %v463_v8, %v200_v26  ;;  %v310_v31 = vadd.f32 %v474_v9, %v309_v27 }
 0x208   :  { %v503_v29 = vpack.c.bf16 %v318_v25, %v318_v25 }
 0x209   :  { %232 = vst.msk [vmem:[%s795_s9 + $0xc] sm:$0xf] %vm228_vm1, %v499_v28  ;;  %v497_v32 = vpack.c.bf16 %v201_v30, %v201_v30  ;;  %v501_v33 = vpack.c.bf16 %v310_v31, %v310_v31 }
 0x20a   :  { %340 = vst.msk [vmem:[%s796_s10 + $0xc] sm:$0xf] %vm228_vm1, %v503_v29 }
 0x20b   :  { %230 = vst.msk [vmem:[%s795_s9 + $0x4] sm:$0xf] %vm228_vm1, %v497_v32  ;;  %338 = vst.msk [vmem:[%s796_s10 + $0x4] sm:$0xf] %vm228_vm1, %v501_v33 }
 0x210   :  { %v560_v35 = vpop.f32.mrf.mxu0 }
 0x211   :  { %v423_v36 = vadd.f32 %v560_v35, %v485_v34 }
 0x212   :  { %v414_v37 = vpop.f32.mrf.mxu0 }
 0x213   :  { %v506_v38 = vpack.c.bf16 %v423_v36, %v423_v36  ;;  %v415_v39 = vadd.f32 %v485_v34, %v414_v37 }
 0x214   :  { %v561_v40 = vpop.f32.mrf.mxu0 }
 0x215   :  { %447 = vst.msk [vmem:[%s798_s11 + $0x8] sm:$0xf] %vm228_vm1, %v506_v38  ;;  %v504_v41 = vpack.c.bf16 %v415_v39, %v415_v39  ;;  %v426_v42 = vadd.f32 %v561_v40, %v485_v34 }
 0x216   :  { %v417_v43 = vpop.f32.mrf.mxu0 }
 0x217   :  { %445 = vst.msk [vmem:[%s798_s11] sm:$0xf] %vm228_vm1, %v504_v41  ;;  %v507_v44 = vpack.c.bf16 %v426_v42, %v426_v42  ;;  %v418_v45 = vadd.f32 %v485_v34, %v417_v43 }
 0x219   :  { %448 = vst.msk [vmem:[%s798_s11 + $0xc] sm:$0xf] %vm228_vm1, %v507_v44  ;;  %v505_v46 = vpack.c.bf16 %v418_v45, %v418_v45 }
 0x21b   :  { %446 = vst.msk [vmem:[%s798_s11 + $0x4] sm:$0xf] %vm228_vm1, %v505_v46 }

// kernel: transformer_block_forward.5
= control target key start
LH: loop header
LB: loop body
LE: loop exit
PB: predicated region body
PF: predicated region fallthrough
CT: control target
= control target key end

     0   :  { %vm90_vm0 = vcmask 523264   ;;  %s821_s0 = inlined_call_operand.vmem [shape: bf16[32,64], index: 0, kind: input, shape index: {}]   ;;  %s822_s1 = inlined_call_operand.vmem [shape: f32[32,64], index: 1, kind: input, shape index: {}]   ;;  %s823_s2 = inlined_call_operand.vmem [shape: bf16[64,64], index: 2, kind: input, shape index: {}]   ;;  %s824_s3 = inlined_call_operand.vmem [shape: f32[1,64], index: 3, kind: input, shape index: {}]   ;;  %s825_s4 = inlined_call_operand.vmem [shape: f32[1,64], index: 4, kind: input, shape index: {}]   ;;  %s826_s5 = inlined_call_operand.vmem [shape: f32[1,64], index: 5, kind: input, shape index: {}]   ;;  %s827_s6 = inlined_call_operand.vmem [shape: bf16[64,128], index: 6, kind: input, shape index: {}]   ;;  %s828_s7 = inlined_call_operand.vmem [shape: f32[1,128], index: 7, kind: input, shape index: {}]   ;;  %s829_s8 = inlined_call_operand.vmem [shape: bf16[128,64], index: 8, kind: input, shape index: {}]   ;;  %s830_s9 = inlined_call_operand.vmem [shape: f32[1,64], index: 9, kind: input, shape index: {}]   ;;  %s831_s10 = inlined_call_operand.hbm [shape: f32[32,64], index: 10, kind: output, shape index: {}]  }
   0x1   :  { %v587_v0 = vld [vmem:[%s823_s2 + $0x18] sm:$0xff]   ;;  %v588_v1 = vld [vmem:[%s823_s2 + $0x10] sm:$0xff]   ;;  %v589_v2 = vld [vmem:[%s823_s2 + $0x8] sm:$0xff]  }
   0x2   :  { %540 = vmatprep.subr.bf16.mxu1 %v587_v0  ;;  %v591_v3 = vld [vmem:[%s821_s0] sm:$0xff]   ;;  %v592_v5 = vld [vmem:[%s821_s0 + $0x8] sm:$0xff]  }
   0x3   :  { %541 = vmatpush3.bf16.msra.mxu1 %v587_v0  ;;  %v590_v4 = vld [vmem:[%s823_s2] sm:$0xff]   ;;  %548 = vmatprep.mubr.msk.bf16.mxu1 %vm90_vm0, %v591_v3 }
   0x4   :  { %542 = vmatprep.subr.bf16.mxu1 %v588_v1 }
   0x7   :  { %543 = vmatpush3.bf16.msra.mxu1 %v588_v1 }
   0x8   :  { %544 = vmatprep.subr.bf16.mxu1 %v589_v2 }
   0xb   :  { %545 = vmatpush3.bf16.msra.mxu1 %v589_v2 }
   0xc   :  { %546 = vmatprep.subr.bf16.mxu1 %v590_v4 }
   0xd   :  { %15 = vsyncpa [#allocation3], 0  ;;  %v491_v6 = vld [vmem:[%s824_s3] ss:$0 sm:$0xff]  ;;  %v148_v8 = vld [vmem:[%s822_s1 + $0x10] sm:$0xff]  ;;  %s643_s14 = smov [#allocation2]  }
   0xe   :  { %v146_v11 = vld [vmem:[%s822_s1] sm:$0xff]  ;;  %v149_v15 = vld [vmem:[%s822_s1 + $0x18] sm:$0xff]  ;;  %v147_v20 = vld [vmem:[%s822_s1 + $0x8] sm:$0xff]  ;;  %s480_s15 = sshll.u32 %s643_s14, 4  ;;  %s481_s15 = int_to_ptr.vmem [resolvable:$true] %s480_s15 }
   0xf   :  { %547 = vmatpush3.bf16.msra.mxu1 %v590_v4  ;;  %v593_v47 = vld [vmem:[%s827_s6 + $0x18] sm:$0xff]   ;;  %v594_v48 = vld [vmem:[%s827_s6 + $0x10] sm:$0xff]   ;;  %v595_v49 = vld [vmem:[%s827_s6 + $0x8] sm:$0xff]   ;;  %p626_p1 = scmp.lt.s32.totalorder %s481_s15, %s481_s15 }
  0x10   :  { %552 = vmatprep.subr.bf16.mxu1 %v593_v47  ;;  %v596_v50 = vld [vmem:[%s827_s6] sm:$0xff]  }
  0x11   :  { %v500_v1 = vld [vmem:[%s825_s4] ss:$0 sm:$0xff] }
  0x12   :  { %549 = vmatmul.mubr.msk.bf16.vlgmr.msra.gmra.mxu1 %vm90_vm0, %v592_v5 }
  0x13   :  { %553 = vmatpush3.bf16.msra.mxu1 %v593_v47 }
  0x14   :  { %554 = vmatprep.subr.bf16.mxu1 %v594_v48 }
  0x17   :  { %555 = vmatpush3.bf16.msra.mxu1 %v594_v48 }
  0x18   :  { %556 = vmatprep.subr.bf16.mxu1 %v595_v49 }
  0x1b   :  { %557 = vmatpush3.bf16.msra.mxu1 %v595_v49 }
  0x1c   :  { %558 = vmatprep.subr.bf16.mxu1 %v596_v50 }
  0x1f   :  { %559 = vmatpush3.bf16.msra.mxu1 %v596_v50 }
  0xd2   :  { %v550_v7 = vpop.f32.mrf.mxu1 }
  0xd3   :  { %v140_v9 = vadd.f32 %v550_v7, %v491_v6  ;;  %v501_v7 = vld [vmem:[%s826_s5] ss:$0 sm:$0xff] }
  0xd4   :  { %v131_v10 = vpop.f32.mrf.mxu1 }
  0xd5   :  { %v730_v12 = vadd.f32 %v148_v8, %v140_v9  ;;  %v132_v13 = vadd.f32 %v491_v6, %v131_v10 }
  0xd6   :  { %v551_v14 = vpop.f32.mrf.mxu1 }
  0xd7   :  { %v735_v16 = vadd.f32 %v146_v11, %v132_v13  ;;  %v143_v17 = vadd.f32 %v551_v14, %v491_v6  ;;  %v162_v18 = vsel %vm90_vm0, %v730_v12, 0.0 }
  0xd8   :  { %163 = vadd.xlane.f32.xlu1 %v162_v18  ;;  %v134_v19 = vpop.f32.mrf.mxu1 }
  0xd9   :  { %v742_v21 = vadd.f32 %v149_v15, %v143_v17  ;;  %v135_v22 = vadd.f32 %v491_v6, %v134_v19  ;;  %v156_v23 = vsel %vm90_vm0, %v735_v16, 0.0 }
  0xda   :  { %157 = vadd.xlane.f32.xlu0 %v156_v23  ;;  %v598_v23 = vld [vmem:[%s829_s8 + $0x30] sm:$0xff]  }
  0xdb   :  { %v746_v24 = vadd.f32 %v147_v20, %v135_v22  ;;  %v165_v25 = vsel %vm90_vm0, %v742_v21, 0.0  ;;  %v597_v22 = vld [vmem:[%s829_s8 + $0x38] sm:$0xff]  }
  0xdc   :  { %166 = vadd.xlane.f32.xlu1 %v165_v25  ;;  %564 = vmatprep.subr.bf16.mxu0 %v597_v22  ;;  %v599_v25 = vld [vmem:[%s829_s8 + $0x28] sm:$0xff]  }
  0xdd   :  { %v159_v26 = vsel %vm90_vm0, %v746_v24, 0.0  ;;  %565 = vmatpush3.bf16.msra.mxu0 %v597_v22 }
  0xde   :  { %160 = vadd.xlane.f32.xlu0 %v159_v26  ;;  %566 = vmatprep.subr.bf16.mxu0 %v598_v23  ;;  %v600_v26 = vld [vmem:[%s829_s8 + $0x20] sm:$0xff]  }
  0xe1   :  { %567 = vmatpush3.bf16.msra.mxu0 %v598_v23 }
  0xe2   :  { %568 = vmatprep.subr.bf16.mxu0 %v599_v25 }
  0xe5   :  { %569 = vmatpush3.bf16.msra.mxu0 %v599_v25 }
  0xe6   :  { %570 = vmatprep.subr.bf16.mxu0 %v600_v26 }
  0xe9   :  { %571 = vmatpush3.bf16.msra.mxu0 %v600_v26 }
 0x161   :  { %v164_v27 = vpop.xlane.xlu1 %163 }
 0x162   :  { %v171_v28 = vmul.f32 0.015625, %v164_v27  ;;  %v601_v27 = vld [vmem:[%s829_s8 + $0x18] sm:$0xff]  }
 0x163   :  { %v158_v29 = vpop.xlane.xlu0 %157  ;;  %572 = vmatprep.subr.bf16.mxu0 %v601_v27 }
 0x164   :  { %v169_v30 = vmul.f32 0.015625, %v158_v29  ;;  %v175_v32 = vsub.f32 %v730_v12, %v171_v28  ;;  %573 = vmatpush3.bf16.msra.mxu0 %v601_v27  ;;  %v602_v28 = vld [vmem:[%s829_s8 + $0x10] sm:$0xff]   ;;  %v603_v29 = vld [vmem:[%s829_s8 + $0x8] sm:$0xff]  }
 0x165   :  { %v167_v31 = vpop.xlane.xlu1 %166  ;;  %574 = vmatprep.subr.bf16.mxu0 %v602_v28 }
 0x166   :  { %v173_v33 = vsub.f32 %v735_v16, %v169_v30  ;;  %v172_v34 = vmul.f32 0.015625, %v167_v31  ;;  %v179_v41 = vmul.f32 %v175_v32, %v175_v32  ;;  %v604_v30 = vld [vmem:[%s829_s8] sm:$0xff]  }
 0x167   :  { %v161_v35 = vpop.xlane.xlu0 %160  ;;  %v502_v31 = vld [vmem:[%s828_s7] ss:$0 sm:$0xff] }
 0x168   :  { %v170_v36 = vmul.f32 0.015625, %v161_v35  ;;  %v177_v37 = vmul.f32 %v173_v33, %v173_v33  ;;  %v176_v38 = vsub.f32 %v742_v21, %v172_v34  ;;  %v187_v43 = vsel %vm90_vm0, %v179_v41, 0.0  ;;  %575 = vmatpush3.bf16.msra.mxu0 %v602_v28 }
 0x169   :  { %576 = vmatprep.subr.bf16.mxu0 %v603_v29 }
 0x16a   :  { %v174_v39 = vsub.f32 %v746_v24, %v170_v36  ;;  %v181_v40 = vsel %vm90_vm0, %v177_v37, 0.0  ;;  %v180_v45 = vmul.f32 %v176_v38, %v176_v38 }
 0x16b   :  { %182 = vadd.xlane.f32.xlu0 %v181_v40 }
 0x16c   :  { %v178_v42 = vmul.f32 %v174_v39, %v174_v39  ;;  %v190_v46 = vsel %vm90_vm0, %v180_v45, 0.0  ;;  %577 = vmatpush3.bf16.msra.mxu0 %v603_v29 }
 0x16d   :  { %578 = vmatprep.subr.bf16.mxu0 %v604_v30 }
 0x16e   :  { %v184_v44 = vsel %vm90_vm0, %v178_v42, 0.0 }
 0x16f   :  { %188 = vadd.xlane.f32.xlu0 %v187_v43  ;;  %185 = vadd.xlane.f32.xlu1 %v184_v44 }
 0x170   :  { %579 = vmatpush3.bf16.msra.mxu0 %v604_v30 }
 0x173   :  { %191 = vadd.xlane.f32.xlu1 %v190_v46 }
 0x1f4   :  { %v183_v51 = vpop.xlane.xlu0 %182 }
 0x1f5   :  { %v193_v52 = vmul.f32 0.015625, %v183_v51 }
 0x1f7   :  { %v197_v53 = vadd.f32 1e-05, %v193_v52 }
 0x1f8   :  { %v186_v54 = vpop.xlane.xlu1 %185  ;;  %v189_v55 = vpop.xlane.xlu0 %188 }
 0x1f9   :  { %605 = vrsqrt.f32 %v197_v53  ;;  %v194_v56 = vmul.f32 0.015625, %v186_v54  ;;  %v195_v57 = vmul.f32 0.015625, %v189_v55 }
 0x1fb   :  { %v198_v58 = vadd.f32 1e-05, %v194_v56  ;;  %v199_v59 = vadd.f32 1e-05, %v195_v57 }
 0x1fc   :  { %v192_v60 = vpop.xlane.xlu1 %191 }
 0x1fd   :  { %607 = vrsqrt.f32 %v198_v58  ;;  %v196_v61 = vmul.f32 0.015625, %v192_v60 }
 0x1fe   :  { %609 = vrsqrt.f32 %v199_v59 }
 0x1ff   :  { %v200_v62 = vadd.f32 1e-05, %v196_v61 }
 0x201   :  { %611 = vrsqrt.f32 %v200_v62  ;;  %v509_v62 = vld [vmem:[%s830_s9] ss:$0 sm:$0xff]  ;;  %s621_s9 = scalar_lea.vmem %s481_s15, 512 }
 0x202   :  { %p622_p0 = scmp.ne.s32.totalorder %s481_s15, %s621_s9  ;;  %p627_p2 = scmp.lt.s32.totalorder %s621_s9, %s621_s9 }
 0x204   :  { %p628_p3 = por %p627_p2, %p626_p1 }
 0x206   :  { %v606_v63 = vpop.eup %605  ;;  %p629_p4 = pnand %p628_p3, %p622_p0 }
 0x207   :  { %v205_v0 = vmul.f32 %v606_v63, %v173_v33 }
 0x209   :  { %v215_v5 = vmul.f32 %v500_v1, %v205_v0 }
 0x20a   :  { %v608_v2 = vpop.eup %607 }
 0x20b   :  { %v610_v3 = vpop.eup %609  ;;  %v206_v4 = vmul.f32 %v608_v2, %v174_v39  ;;  %v225_v11 = vadd.f32 %v501_v7, %v215_v5 }
 0x20c   :  { %v207_v6 = vmul.f32 %v610_v3, %v175_v32 }
 0x20d   :  { %v216_v8 = vmul.f32 %v500_v1, %v206_v4 }
 0x20e   :  { %v612_v9 = vpop.eup %611  ;;  %v217_v14 = vmul.f32 %v500_v1, %v207_v6 }
 0x20f   :  { %v208_v10 = vmul.f32 %v612_v9, %v176_v38  ;;  %v226_v13 = vadd.f32 %v501_v7, %v216_v8 }
 0x210   :  { %v227_v18 = vadd.f32 %v501_v7, %v217_v14 }
 0x211   :  { %v229_v15 = vpack.c.bf16 %v226_v13, %v225_v11  ;;  %v218_v17 = vmul.f32 %v500_v1, %v208_v10 }
 0x213   :  { %560 = vmatprep.mubr.msk.bf16.mxu1 %vm90_vm0, %v229_v15  ;;  %v228_v19 = vadd.f32 %v501_v7, %v218_v17 }
 0x215   :  { %v230_v20 = vpack.c.bf16 %v228_v19, %v227_v18 }
 0x217   :  { %561 = vmatmul.mubr.msk.bf16.vlgmr.msra.gmra.mxu1 %vm90_vm0, %v230_v20 }
 0x2d7   :  { %v562_v32 = vpop.f32.mrf.mxu1 }
 0x2d8   :  { %v319_v33 = vadd.f32 %v562_v32, %v502_v31 }
 0x2d9   :  { %v310_v34 = vpop.f32.mrf.mxu1 }
 0x2da   :  { %v311_v35 = vadd.f32 %v502_v31, %v310_v34  ;;  %v331_v36 = vmul.f32 0.70710677, %v319_v33  ;;  %v327_v55 = vmul.f32 0.5, %v319_v33 }
 0x2db   :  { %v563_v37 = vpop.f32.mrf.mxu1 }
 0x2dc   :  { %v329_v38 = vmul.f32 0.70710677, %v311_v35  ;;  %v322_v39 = vadd.f32 %v563_v37, %v502_v31  ;;  %v325_v52 = vmul.f32 0.5, %v311_v35 }
 0x2dd   :  { %v313_v40 = vpop.f32.mrf.mxu1 }
 0x2de   :  { %613 = verf.f32 %v329_v38  ;;  %v332_v41 = vmul.f32 0.70710677, %v322_v39  ;;  %v314_v42 = vadd.f32 %v502_v31, %v313_v40  ;;  %v328_v51 = vmul.f32 0.5, %v322_v39 }
 0x2df   :  { %615 = verf.f32 %v331_v36 }
 0x2e0   :  { %617 = verf.f32 %v332_v41  ;;  %v330_v43 = vmul.f32 0.70710677, %v314_v42  ;;  %v326_v53 = vmul.f32 0.5, %v314_v42 }
 0x2e2   :  { %619 = verf.f32 %v330_v43 }
 0x2eb   :  { %v614_v44 = vpop.eup %613 }
 0x2ec   :  { %v616_v45 = vpop.eup %615  ;;  %v337_v48 = vadd.f32 1.0, %v614_v44 }
 0x2ed   :  { %v618_v46 = vpop.eup %617  ;;  %v339_v50 = vadd.f32 1.0, %v616_v45 }
 0x2ee   :  { %v340_v47 = vadd.f32 1.0, %v618_v46  ;;  %v341_v57 = vmul.f32 %v337_v48, %v325_v52 }
 0x2ef   :  { %v620_v49 = vpop.eup %619  ;;  %v343_v59 = vmul.f32 %v339_v50, %v327_v55 }
 0x2f0   :  { %v338_v54 = vadd.f32 1.0, %v620_v49  ;;  %v344_v56 = vmul.f32 %v340_v47, %v328_v51 }
 0x2f2   :  { %v342_v58 = vmul.f32 %v338_v54, %v326_v53  ;;  %v346_v61 = vpack.c.bf16 %v344_v56, %v343_v59 }
 0x2f4   :  { %v345_v60 = vpack.c.bf16 %v342_v58, %v341_v57 }
 0x2f6   :  { %580 = vmatprep.mubr.bf16.mxu0 %v345_v60 }
 0x2f7   :  { %581 = vmatmul.mubr.bf16.vlgmr.msra.gmra.mxu0 %v346_v61 }
 0x3b7   :  { %v582_v63 = vpop.f32.mrf.mxu0 }
 0x3b8   :  { %v461_v0 = vadd.f32 %v582_v63, %v509_v62 }
 0x3b9   :  { %v452_v1 = vpop.f32.mrf.mxu0 }
 0x3ba   :  { %v469_v2 = vadd.f32 %v461_v0, %v730_v12  ;;  %v453_v3 = vadd.f32 %v509_v62, %v452_v1 }
 0x3bb   :  { %v583_v4 = vpop.f32.mrf.mxu0 }
 0x3bc   :  { %473 = vst.msk [vmem:[#allocation2 + $0x10] sm:$0xff] %vm90_vm0, %v469_v2  ;;  %v467_v5 = vadd.f32 %v453_v3, %v735_v16  ;;  %v464_v6 = vadd.f32 %v583_v4, %v509_v62 }
 0x3bd   :  { %v455_v7 = vpop.f32.mrf.mxu0 }
 0x3be   :  { %471 = vst.msk [vmem:[#allocation2] sm:$0xff] %vm90_vm0, %v467_v5  ;;  %v470_v8 = vadd.f32 %v464_v6, %v742_v21  ;;  %v456_v9 = vadd.f32 %v509_v62, %v455_v7 }
 0x3c0   :  { %474 = vst.msk [vmem:[#allocation2 + $0x18] sm:$0xff] %vm90_vm0, %v470_v8  ;;  %v468_v10 = vadd.f32 %v456_v9, %v746_v24 }
 0x3c2   :  { %472 = vst.msk [vmem:[#allocation2 + $0x8] sm:$0xff] %vm90_vm0, %v468_v10 }
 0x3c3   :  { %632 = shalt.err (!%p629_p4)
}
 0x3c4   :  { %s644_s16 = smov 128   ;;  %s645_s17 = smov 8  }
 0x3c5   :  { %486 = dma.vmem_to_hbm [thread:$0]  %s481_s15, 512, %s831_s10, [#allocation3], %s644_s16, %s644_s16, %s645_s17  }
 0x3c6   :  { %641 = dma.done.wait [#allocation3], 512  }
 0x3c7   :  { %642 = vsyncadd [#allocation3], 4294966784 }
 0x3c8   :  { %490 = vsyncpa [#allocation3], 1 }

// kernel: transformer_block_forward.4
= control target key start
LH: loop header
LB: loop body
LE: loop exit
PB: predicated region body
PF: predicated region fallthrough
CT: control target
= control target key end

     0   :  { %s2231_s12 = smov 0   ;;  %s2550_s0 = inlined_call_operand.vmem [shape: bf16[2,16,64], index: 0, kind: input, shape index: {}]   ;;  %s2551_s1 = inlined_call_operand.vmem [shape: bf16[2,16,64], index: 1, kind: input, shape index: {}]   ;;  %s2552_s2 = inlined_call_operand.vmem [shape: bf16[2,16,64], index: 2, kind: input, shape index: {}]   ;;  %s2553_s3 = inlined_call_operand.vmem [shape: bf16[2,16,64], index: 3, kind: output, shape index: {}]  }
   0x1 LB: > { %s2003_s13 = sadd.s32 4294967295, %s2198_s12   ;;  %p2007_p0 = scmp.ge.s32.totalorder %s2198_s12, 1  ;;  %s2198_s12 = sphi %s2231_s12, %s13_s12  }
   0x2   : > { %p157_p1 = scmp.lt.s32.totalorder %s2198_s12, 3 }
   0x4   : > { %p158_p2 = pnand %p2007_p0, %p157_p1 }
   0x5   : > { %p191_p3 = scmp.lt.s32.totalorder (!%p158_p2), %s2003_s13, 1  ;;  %s2200_s18 = smov (!%p158_p2), 96  }
   0x6   : > { %161 = sbr.rel (%p158_p2) target bundleno = 937 (0x3a9), region = 32  ;;  %s2201_s19 = smov (!%p158_p2), 112  }
   0x7   : > { %s2202_s23 = smov (!%p158_p2), 80   ;;  %s2208_s27 = smov (!%p158_p2), 32  }
   0x8   : > { %s2209_s28 = smov (!%p158_p2), 16   ;;  %s2210_s29 = smov (!%p158_p2), 48  }
   0xb   : > { %s2555_s13 = smov (!%p191_p3, %s2003_s13), 1  ;;  %v2203_v4 = vmov 0.0   ;;  %vm2204_vm0 = vmmov 0   ;;  %v2205_v7 = vmov 1983009808   ;;  %v256_v9 = vlaneseq }
   0xc   : > { %s2239_s14 = sshll.u32 %s2555_s13, 3  ;;  %2078 = vmatprep.subr.bf16.mxu0 %v2203_v4  ;;  %2084 = vmatprep.subr.bf16.mxu1 %v2203_v4  ;;  %v254_v8 = vunpack.c.l.s4 %v2205_v7  ;;  %v2206_v12 = vmov 1934713408   ;;  %vm1118_vm1 = vcmask 130048   ;;  %vm1907_vm2 = vcmask 261120  }
   0xd   : > { %s200_s17 = scalar_lea.vmem %s2551_s1, %s2239_s14  ;;  %s195_s22 = scalar_lea.vmem %s2550_s0, %s2239_s14  ;;  %2080 = vmatprep.mubr.msk.bf16.mxu0 %vm2204_vm0, %v2203_v4  ;;  %2086 = vmatprep.mubr.msk.bf16.mxu1 %vm2204_vm0, %v2203_v4  ;;  %v271_v13 = vunpack.c.l.s4 %v2206_v12  ;;  %v257_v15 = vshrl.u32 %v256_v9, 7  ;;  %vm1910_vm3 = vcmask 392192   ;;  %vm1921_vm4 = vcmask 519168  }
   0xe   : > { %v2245_v0 = vld [vmem:[%s200_s17] sm:$0xf]  ;;  %v513_v1 = vld [vmem:[%s200_s17 + $0x4] sm:$0xf]  ;;  %s205_s26 = scalar_lea.vmem %s2552_s2, %s2239_s14  ;;  %v255_v14 = vunpack.c.0.s8 %v254_v8  ;;  %s210_s5 = scalar_lea.vmem %s2553_s3, %s2239_s14 }
   0xf   : > { %520 = vrot.lane.b32.xlu1 %v2245_v0, %s2200_s18  ;;  %516 = vrot.lane.b32.xlu0 %v2245_v0, %s2201_s19  ;;  %v2258_v2 = vld [vmem:[%s195_s22 + $0x4] sm:$0xf]  ;;  %v2260_v3 = vld [vmem:[%s195_s22] sm:$0xf]  ;;  %v531_v16 = vshrl.u32 %v2245_v0, 16  ;;  %v543_v19 = vshrl.u32 %v513_v1, 16  ;;  %v272_v21 = vunpack.c.0.s8 %v271_v13 }
  0x10   : > { %v2282_v5 = vld [vmem:[%s205_s26] sm:$0xf]  ;;  %v2284_v6 = vld [vmem:[%s205_s26 + $0x4] sm:$0xf]  ;;  %v2295_v23 = vsub.s32 %v255_v14, %v257_v15  ;;  %v243_v38 = vshrl.u32 %v2258_v2, 16  ;;  %v231_v48 = vshrl.u32 %v2260_v3, 16 }
  0x11   : > { %v2298_v28 = vsub.s32 %v272_v21, %v257_v15 }
  0x13   : > { %522 = vrot.lane.b32.xlu1 %v513_v1, %s2200_s18  ;;  %518 = vrot.lane.b32.xlu0 %v513_v1, %s2201_s19 }
  0x17   : > { %526 = vrot.lane.b32.xlu1 %v513_v1, %s2202_s23  ;;  %524 = vrot.lane.b32.xlu0 %v2245_v0, %s2202_s23 }
  0x1b   : > { %218 = vrot.lane.b32.xlu1 %v2258_v2, %s2201_s19  ;;  %216 = vrot.lane.b32.xlu0 %v2260_v3, %s2201_s19 }
  0x1f   : > { %222 = vrot.lane.b32.xlu1 %v2258_v2, %s2200_s18  ;;  %220 = vrot.lane.b32.xlu0 %v2260_v3, %s2200_s18 }
  0x23   : > { %226 = vrot.lane.b32.xlu1 %v2258_v2, %s2202_s23  ;;  %224 = vrot.lane.b32.xlu0 %v2260_v3, %s2202_s23 }
  0x27   : > { %816 = vrot.lane.b32.xlu1 %v2282_v5, %s2201_s19  ;;  %818 = vrot.lane.b32.xlu0 %v2284_v6, %s2201_s19 }
  0x2b   : > { %820 = vrot.lane.b32.xlu1 %v2282_v5, %s2200_s18  ;;  %824 = vrot.lane.b32.xlu0 %v2282_v5, %s2202_s23 }
  0x2f   : > { %822 = vrot.lane.b32.xlu1 %v2284_v6, %s2200_s18 }
  0x81   : > { %v521_v10 = vpop.permute.xlu1 %520  ;;  %v517_v11 = vpop.permute.xlu0 %516 }
  0x82   : > { %v532_v17 = vshrl.u32 %v517_v11, 16  ;;  %v530_v24 = vpack.i.b16 %v517_v11, %v2245_v0  ;;  %v537_v35 = vshrl.u32 %v521_v10, 16 }
  0x84   : > { %v533_v26 = vpack.i.b16 %v532_v17, %v531_v16  ;;  %v559_v36 = vrot.slane %v530_v24, %v2295_v23 }
  0x85   : > { %v523_v18 = vpop.permute.xlu1 %522  ;;  %v519_v20 = vpop.permute.xlu0 %518 }
  0x86   : > { %v544_v22 = vshrl.u32 %v519_v20, 16  ;;  %v542_v25 = vpack.i.b16 %v519_v20, %v513_v1  ;;  %v549_v31 = vshrl.u32 %v523_v18, 16  ;;  %v593_v43 = vrot.slane %v533_v26, %v2295_v23 }
  0x88   : > { %v545_v27 = vpack.i.b16 %v544_v22, %v543_v19  ;;  %v627_v39 = vrot.slane %v542_v25, %v2295_v23 }
  0x89   : > { %v527_v29 = vpop.permute.xlu1 %526  ;;  %v525_v30 = vpop.permute.xlu0 %524 }
  0x8a   : > { %v548_v32 = vpack.i.b16 %v527_v29, %v523_v18  ;;  %v550_v33 = vshrl.u32 %v527_v29, 16  ;;  %v536_v34 = vpack.i.b16 %v525_v30, %v521_v10  ;;  %v538_v37 = vshrl.u32 %v525_v30, 16 }
  0x8b   : > { %v661_v44 = vrot.slane %v545_v27, %v2295_v23 }
  0x8c   : > { %v551_v40 = vpack.i.b16 %v550_v33, %v549_v31  ;;  %v635_v41 = vrot.slane %v548_v32, %v2295_v23  ;;  %v567_v42 = vrot.slane %v536_v34, %v2295_v23  ;;  %v539_v45 = vpack.i.b16 %v538_v37, %v537_v35 }
  0x8d   : > { %v219_v46 = vpop.permute.xlu1 %218  ;;  %v217_v47 = vpop.permute.xlu0 %216 }
  0x8e   : > { %v636_v49 = vcombine.low %v627_v39, %v635_v41  ;;  %v637_v50 = vcombine.high %v627_v39, %v635_v41  ;;  %v669_v51 = vrot.slane %v551_v40, %v2295_v23  ;;  %v568_v52 = vcombine.low %v559_v36, %v567_v42 }
  0x8f   : > { %v569_v53 = vcombine.high %v559_v36, %v567_v42  ;;  %v601_v54 = vrot.slane %v539_v45, %v2295_v23  ;;  %v242_v55 = vpack.i.b16 %v219_v46, %v2258_v2  ;;  %v244_v56 = vshrl.u32 %v219_v46, 16 }
  0x90   : > { %v644_v57 = vrot.slane %v636_v49, %v2298_v28  ;;  %v651_v58 = vrot.slane %v637_v50, %v2298_v28  ;;  %v670_v59 = vcombine.low %v661_v44, %v669_v51  ;;  %v671_v60 = vcombine.high %v661_v44, %v669_v51 }
  0x91   : > { %v576_v61 = vrot.slane %v568_v52, %v2298_v28  ;;  %v583_v62 = vrot.slane %v569_v53, %v2298_v28  ;;  %v602_v63 = vcombine.low %v593_v43, %v601_v54  ;;  %v603_v0 = vcombine.high %v593_v43, %v601_v54  ;;  %v223_v1 = vpop.permute.xlu1 %222  ;;  %v221_v7 = vpop.permute.xlu0 %220 }
  0x92   : > { %v2316_v8 = vrot.slane %v670_v59, %v2298_v28  ;;  %v2319_v2 = vrot.slane %v671_v60, %v2298_v28  ;;  %v738_v9 = vcombine.low %v644_v57, %v651_v58  ;;  %v2022_v10 = vcombine.high %v644_v57, %v651_v58 }
  0x93   : > { %v610_v11 = vrot.slane %v602_v63, %v2298_v28  ;;  %v617_v12 = vrot.slane %v603_v0, %v2298_v28  ;;  %v688_v13 = vcombine.low %v576_v61, %v583_v62  ;;  %v2020_v14 = vcombine.high %v576_v61, %v583_v62 }
  0x94   : > { %v2324_v15 = vrot.slane %v738_v9, %v2295_v23  ;;  %v2327_v16 = vrot.slane %v2022_v10, %v2295_v23  ;;  %v763_v17 = vcombine.low %v2316_v8, %v2319_v2  ;;  %v2023_v18 = vcombine.high %v2316_v8, %v2319_v2 }
  0x95   : > { %v695_v19 = vrot.slane %v688_v13, %v2295_v23  ;;  %v703_v20 = vrot.slane %v2020_v14, %v2295_v23  ;;  %v713_v21 = vcombine.low %v610_v11, %v617_v12  ;;  %v2021_v22 = vcombine.high %v610_v11, %v617_v12  ;;  %v227_v24 = vpop.permute.xlu1 %226  ;;  %v225_v25 = vpop.permute.xlu0 %224 }
  0x96   : > { %v245_v26 = vpack.i.b16 %v244_v56, %v243_v38  ;;  %v327_v27 = vrot.slane %v242_v55, %v2295_v23  ;;  %v230_v29 = vpack.i.b16 %v217_v47, %v2260_v3  ;;  %v232_v30 = vshrl.u32 %v217_v47, 16 }
  0x97   : > { %v249_v31 = vshrl.u32 %v223_v1, 16  ;;  %v237_v32 = vshrl.u32 %v221_v7, 16  ;;  %v248_v33 = vpack.i.b16 %v227_v24, %v223_v1  ;;  %v250_v34 = vshrl.u32 %v227_v24, 16 }
  0x98   : > { %v361_v35 = vrot.slane %v245_v26, %v2295_v23  ;;  %v233_v36 = vpack.i.b16 %v232_v30, %v231_v48  ;;  %v259_v37 = vrot.slane %v230_v29, %v2295_v23  ;;  %v236_v39 = vpack.i.b16 %v225_v25, %v221_v7 }
  0x99   : > { %v251_v40 = vpack.i.b16 %v250_v34, %v249_v31  ;;  %v335_v41 = vrot.slane %v248_v33, %v2295_v23  ;;  %v238_v42 = vshrl.u32 %v225_v25, 16  ;;  %v704_v38 = vcombine.low %v695_v19, %v703_v20 }
  0x9a   : > { %v293_v43 = vrot.slane %v233_v36, %v2295_v23  ;;  %v267_v3 = vrot.slane %v236_v39, %v2295_v23  ;;  %v720_v44 = vrot.slane %v713_v21, %v2295_v23  ;;  %v728_v45 = vrot.slane %v2021_v22, %v2295_v23 }
  0x9b   : > { %v336_v46 = vcombine.low %v327_v27, %v335_v41  ;;  %v337_v47 = vcombine.high %v327_v27, %v335_v41  ;;  %v369_v48 = vrot.slane %v251_v40, %v2295_v23  ;;  %v239_v49 = vpack.i.b16 %v238_v42, %v237_v32 }
  0x9c   : > { %v268_v50 = vcombine.low %v259_v37, %v267_v3  ;;  %v269_v51 = vcombine.high %v259_v37, %v267_v3  ;;  %v2346_v52 = vrot.slane %v704_v38, %v2298_v28  ;;  %v729_v53 = vcombine.low %v720_v44, %v728_v45 }
  0x9d   : > { %v344_v54 = vrot.slane %v336_v46, %v2298_v28  ;;  %v351_v55 = vrot.slane %v337_v47, %v2298_v28  ;;  %v370_v56 = vcombine.low %v361_v35, %v369_v48  ;;  %v371_v57 = vcombine.high %v361_v35, %v369_v48 }
  0x9e   : > { %v276_v58 = vrot.slane %v268_v50, %v2298_v28  ;;  %v283_v59 = vrot.slane %v269_v51, %v2298_v28  ;;  %v301_v60 = vrot.slane %v239_v49, %v2295_v23  ;;  %v736_v61 = vrot.slane %v729_v53, %v2298_v28 }
  0x9f   : > { %v378_v62 = vrot.slane %v370_v56, %v2298_v28  ;;  %v385_v63 = vrot.slane %v371_v57, %v2298_v28  ;;  %v438_v0 = vcombine.low %v344_v54, %v351_v55  ;;  %v2018_v1 = vcombine.high %v344_v54, %v351_v55 }
  0xa0   : > { %v302_v7 = vcombine.low %v293_v43, %v301_v60  ;;  %v303_v9 = vcombine.high %v293_v43, %v301_v60  ;;  %v388_v10 = vcombine.low %v276_v58, %v283_v59  ;;  %v2016_v11 = vcombine.high %v276_v58, %v283_v59 }
  0xa1   : > { %v445_v12 = vrot.slane %v438_v0, %v2295_v23  ;;  %v453_v13 = vrot.slane %v2018_v1, %v2295_v23  ;;  %v463_v14 = vcombine.low %v378_v62, %v385_v63  ;;  %v2019_v19 = vcombine.high %v378_v62, %v385_v63 }
  0xa2   : > { %v310_v20 = vrot.slane %v302_v7, %v2298_v28  ;;  %v317_v21 = vrot.slane %v303_v9, %v2298_v28  ;;  %v395_v22 = vrot.slane %v388_v10, %v2295_v23  ;;  %v403_v24 = vrot.slane %v2016_v11, %v2295_v23 }
  0xa3   : > { %v454_v25 = vcombine.low %v445_v12, %v453_v13  ;;  %v470_v26 = vrot.slane %v463_v14, %v2295_v23  ;;  %v478_v27 = vrot.slane %v2019_v19, %v2295_v23  ;;  %v754_v29 = vcombine.low %v2324_v15, %v2327_v16 }
  0xa4   : > { %v404_v30 = vcombine.low %v395_v22, %v403_v24  ;;  %v413_v31 = vcombine.low %v310_v20, %v317_v21  ;;  %v2017_v32 = vcombine.high %v310_v20, %v317_v21  ;;  %v770_v33 = vrot.slane %v763_v17, %v2295_v23 }
  0xa5   : > { %v479_v34 = vcombine.low %v470_v26, %v478_v27  ;;  %v778_v35 = vrot.slane %v2023_v18, %v2295_v23  ;;  %v761_v15 = vrot.slane %v754_v29, %v2298_v28  ;;  %v792_v16 = vshrl.u32 %v736_v61, 16 }
  0xa6   : > { %v420_v36 = vrot.slane %v413_v31, %v2295_v23  ;;  %v428_v37 = vrot.slane %v2017_v32, %v2295_v23  ;;  %v791_v40 = vshrl.u32 %v2346_v52, 16  ;;  %v411_v42 = vrot.slane %v404_v30, %v2298_v28 }
  0xa7   : > { %v779_v39 = vcombine.low %v770_v33, %v778_v35  ;;  %v461_v17 = vrot.slane %v454_v25, %v2298_v28  ;;  %v486_v38 = vrot.slane %v479_v34, %v2298_v28  ;;  %v790_v2 = vpack.i.b16 %v736_v61, %v2346_v52 }
  0xa8   : > { %v429_v41 = vcombine.low %v420_v36, %v428_v37  ;;  %v2207_v18 = vmov 0   ;;  %v793_v3 = vpack.i.b16 %v792_v16, %v791_v40  ;;  %v803_v44 = vshrl.u32 %v761_v15, 16 }
  0xa9   : > { %v786_v8 = vrot.slane %v779_v39, %v2298_v28  ;;  %v737_v43 = vcombine.high %v736_v61, %v2207_v18  ;;  %v712_v46 = vcombine.high %v2346_v52, %v2207_v18  ;;  %v762_v49 = vcombine.high %v761_v15, %v2207_v18 }
  0xaa   : > { %v436_v45 = vrot.slane %v429_v41, %v2298_v28  ;;  %v502_v51 = vpack.i.b16 %v486_v38, %v461_v17  ;;  %v491_v53 = vshrl.u32 %v411_v42, 16  ;;  %v503_v54 = vshrl.u32 %v461_v17, 16 }
  0xab   : > { %v802_v47 = vpack.i.b16 %v786_v8, %v761_v15  ;;  %v804_v48 = vshrl.u32 %v786_v8, 16  ;;  %v787_v50 = vcombine.high %v786_v8, %v2207_v18  ;;  %v504_v55 = vshrl.u32 %v486_v38, 16 }
  0xac   : > { %v492_v58 = vshrl.u32 %v436_v45, 16  ;;  %v798_v59 = vshrl.u32 %v737_v43, 16  ;;  %v490_v60 = vpack.i.b16 %v436_v45, %v411_v42  ;;  %v796_v61 = vpack.i.b16 %v737_v43, %v712_v46 }
  0xad   : > { %v2029_v56 = vcombine.low %v790_v2, %v802_v47  ;;  %v805_v57 = vpack.i.b16 %v804_v48, %v803_v44  ;;  %v797_v62 = vshrl.u32 %v712_v46, 16  ;;  %v810_v63 = vshrl.u32 %v787_v50, 16 }
  0xae   : > { %v808_v1 = vpack.i.b16 %v787_v50, %v762_v49  ;;  %v809_v7 = vshrl.u32 %v762_v49, 16  ;;  %v505_v9 = vpack.i.b16 %v504_v55, %v503_v54  ;;  %v493_v11 = vpack.i.b16 %v492_v58, %v491_v53 }
  0xaf   : > { %v1123_v52 = vsel %vm1118_vm1, %v2029_v56, 0  ;;  %v2032_v0 = vcombine.low %v793_v3, %v805_v57  ;;  %v799_v12 = vpack.i.b16 %v798_v59, %v797_v62  ;;  %v2028_v14 = vcombine.low %v490_v60, %v502_v51  ;;  %v817_v59 = vpop.permute.xlu1 %816  ;;  %v819_v60 = vpop.permute.xlu0 %818 }
  0xb0   : > { %2079 = vmatpush3.bf16.xpose.msra.mxu0 %v1123_v52  ;;  %v811_v13 = vpack.i.b16 %v810_v63, %v809_v7  ;;  %v2035_v19 = vcombine.low %v796_v61, %v808_v1  ;;  %v437_v20 = vcombine.high %v436_v45, %v2207_v18  ;;  %v487_v21 = vcombine.high %v486_v38, %v2207_v18 }
  0xb1   : > { %v1176_v10 = vsel %vm1118_vm1, %v2032_v0, 0  ;;  %2090 = vmatprep.subr.bf16.mxu0 %v2203_v4  ;;  %v2031_v22 = vcombine.low %v493_v11, %v505_v9  ;;  %v412_v25 = vcombine.high %v411_v42, %v2207_v18  ;;  %v462_v26 = vcombine.high %v461_v17, %v2207_v18 }
  0xb2   : > { %2085 = vmatpush3.bf16.xpose.msra.mxu1 %v1176_v10  ;;  %v2038_v24 = vcombine.low %v799_v12, %v811_v13  ;;  %v1229_v27 = vsel %vm1118_vm1, %v2035_v19, 0  ;;  %v498_v29 = vshrl.u32 %v437_v20, 16  ;;  %v510_v30 = vshrl.u32 %v487_v21, 16 }
  0xb3   : > { %2096 = vmatprep.subr.bf16.mxu1 %v2203_v4  ;;  %v496_v31 = vpack.i.b16 %v437_v20, %v412_v25  ;;  %v508_v33 = vpack.i.b16 %v487_v21, %v462_v26  ;;  %v497_v34 = vshrl.u32 %v412_v25, 16  ;;  %v509_v35 = vshrl.u32 %v462_v26, 16  ;;  %v821_v61 = vpop.permute.xlu1 %820  ;;  %v825_v62 = vpop.permute.xlu0 %824 }
  0xb4   : > { %v1282_v32 = vsel %vm1118_vm1, %v2038_v24, 0  ;;  %v831_v63 = vshrl.u32 %v2282_v5, 16  ;;  %v832_v52 = vshrl.u32 %v817_v59, 16  ;;  %v837_v0 = vshrl.u32 %v821_v61, 16 }
  0xb5   : > { %v499_v36 = vpack.i.b16 %v498_v29, %v497_v34  ;;  %v511_v37 = vpack.i.b16 %v510_v30, %v509_v35  ;;  %v2034_v15 = vcombine.low %v496_v31, %v508_v33  ;;  %v838_v1 = vshrl.u32 %v825_v62, 16 }
  0xb6   : > { %v830_v7 = vpack.i.b16 %v817_v59, %v2282_v5  ;;  %v836_v9 = vpack.i.b16 %v825_v62, %v821_v61  ;;  %v833_v10 = vpack.i.b16 %v832_v52, %v831_v63  ;;  %v843_v31 = vshrl.u32 %v2284_v6, 16 }
  0xb7   : > { %2081 = vmatmul.mubr.msk.bf16.vlgmr.msra.gmra.mxu0 %vm1118_vm1, %v2028_v14  ;;  %v2037_v16 = vcombine.low %v499_v36, %v511_v37  ;;  %v839_v11 = vpack.i.b16 %v838_v1, %v837_v0  ;;  %v823_v25 = vpop.permute.xlu1 %822 }
  0xb8   : > { %2091 = vmatpush3.bf16.xpose.msra.mxu0 %v1229_v27  ;;  %2092 = vmatprep.mubr.msk.bf16.mxu0 %vm2204_vm0, %v2203_v4  ;;  %v859_v12 = vrot.slane %v830_v7, %v2295_v23  ;;  %v867_v13 = vrot.slane %v836_v9, %v2295_v23  ;;  %v893_v14 = vrot.slane %v833_v10, %v2295_v23 }
  0xb9   : > { %2087 = vmatmul.mubr.msk.bf16.vlgmr.msra.gmra.mxu1 %vm1118_vm1, %v2031_v22  ;;  %2102 = vmatprep.subr.bf16.mxu0 %v2203_v4  ;;  %v901_v19 = vrot.slane %v839_v11, %v2295_v23 }
  0xba   : > { %2097 = vmatpush3.bf16.xpose.msra.mxu1 %v1282_v32  ;;  %2098 = vmatprep.mubr.msk.bf16.mxu1 %vm2204_vm0, %v2203_v4  ;;  %v868_v20 = vcombine.low %v859_v12, %v867_v13  ;;  %v869_v21 = vcombine.high %v859_v12, %v867_v13  ;;  %v844_v32 = vshrl.u32 %v819_v60, 16 }
  0xbb   : > { %2108 = vmatprep.subr.bf16.mxu1 %v2203_v4  ;;  %v902_v22 = vcombine.low %v893_v14, %v901_v19  ;;  %v903_v24 = vcombine.high %v893_v14, %v901_v19 }
  0xbc   : > { %v876_v5 = vrot.slane %v868_v20, %v2298_v28  ;;  %v883_v29 = vrot.slane %v869_v21, %v2298_v28 }
  0xbd   : > { %v910_v33 = vrot.slane %v902_v22, %v2298_v28  ;;  %v917_v34 = vrot.slane %v903_v24, %v2298_v28 }
  0xbf   : > { %2093 = vmatmul.mubr.msk.bf16.vlgmr.msra.gmra.mxu0 %vm1118_vm1, %v2034_v15 }
  0xc0   : > { %2104 = vmatprep.mubr.msk.bf16.mxu0 %vm2204_vm0, %v2203_v4 }
  0xc1   : > { %2099 = vmatmul.mubr.msk.bf16.vlgmr.msra.gmra.mxu1 %vm1118_vm1, %v2037_v16  ;;  %v988_v16 = vcombine.low %v876_v5, %v883_v29 }
  0xc2   : > { %2110 = vmatprep.mubr.msk.bf16.mxu1 %vm2204_vm0, %v2203_v4 }
 0x177   : > { %v1159_v39 = vpop.f32.mrf.mxu0 }
 0x178   : > { %v1325_v40 = vsel %vm1118_vm1, %v1159_v39, -inf }
 0x179   : > { %v2414_v41 = vpop.f32.mrf.mxu1  ;;  %1326 = vmax.xlane.f32.xlu0 %v1325_v40  ;;  %v2082_v42 = vpop.f32.mrf.mxu0  ;;  %v842_v40 = vpack.i.b16 %v819_v60, %v2284_v6 }
 0x17a   : > { %v1331_v8 = vsel %vm1118_vm1, %v2414_v41, -inf }
 0x17b   : > { %v2416_v17 = vpop.f32.mrf.mxu0  ;;  %v2088_v38 = vpop.f32.mrf.mxu1 }
 0x17c   : > { %v1328_v2 = vsel %vm1118_vm1, %v2416_v17, -inf }
 0x17d   : > { %v2422_v43 = vpop.f32.mrf.mxu1  ;;  %1332 = vmax.xlane.f32.xlu0 %v1331_v8  ;;  %1329 = vmax.xlane.f32.xlu1 %v1328_v2  ;;  %v2083_v3 = vpop.f32.mrf.mxu0  ;;  %v845_v8 = vpack.i.b16 %v844_v32, %v843_v31  ;;  %v1013_v2 = vcombine.low %v910_v33, %v917_v34 }
 0x17e   : > { %v1334_v46 = vsel %vm1118_vm1, %v2422_v43, -inf  ;;  %v2025_v3 = vcombine.high %v910_v33, %v917_v34 }
 0x17f   : > { %v2089_v44 = vpop.f32.mrf.mxu1  ;;  %v2424_v45 = vpop.f32.mrf.mxu0  ;;  %v1020_v59 = vrot.slane %v1013_v2, %v2295_v23 }
 0x180   : > { %v1337_v51 = vsel %vm1118_vm1, %v2424_v45, -inf  ;;  %v849_v44 = vshrl.u32 %v823_v25, 16  ;;  %v1028_v60 = vrot.slane %v2025_v3, %v2295_v23 }
 0x181   : > { %1335 = vmax.xlane.f32.xlu0 %v1334_v46  ;;  %v2094_v47 = vpop.f32.mrf.mxu0  ;;  %v2428_v48 = vpop.f32.mrf.mxu1 }
 0x182   : > { %v1343_v56 = vsel %vm1118_vm1, %v2428_v48, -inf  ;;  %v1029_v11 = vcombine.low %v1020_v59, %v1028_v60 }
 0x183   : > { %v2430_v49 = vpop.f32.mrf.mxu0  ;;  %v2100_v50 = vpop.f32.mrf.mxu1 }
 0x184   : > { %v1340_v58 = vsel %vm1118_vm1, %v2430_v49, -inf  ;;  %v1036_v32 = vrot.slane %v1029_v11, %v2298_v28 }
 0x185   : > { %v2434_v53 = vpop.f32.mrf.mxu1  ;;  %1338 = vmax.xlane.f32.xlu0 %v1337_v51  ;;  %v2095_v54 = vpop.f32.mrf.mxu0 }
 0x186   : > { %v1346_v57 = vsel %vm1118_vm1, %v2434_v53, -inf  ;;  %v1037_v3 = vcombine.high %v1036_v32, %v2207_v18 }
 0x187   : > { %v2101_v55 = vpop.f32.mrf.mxu1 }
 0x189   : > { %1344 = vmax.xlane.f32.xlu0 %v1343_v56 }
 0x18d   : > { %1347 = vmax.xlane.f32.xlu0 %v1346_v57 }
 0x18e   : > { %826 = vrot.lane.b32.xlu1 %v2284_v6, %s2202_s23  ;;  %v927_v6 = vrot.slane %v842_v40, %v2295_v23 }
 0x1b2   : > { %1341 = vmax.xlane.f32.xlu1 %v1340_v58  ;;  %v961_v58 = vrot.slane %v845_v8, %v2295_v23  ;;  %v1092_v8 = vshrl.u32 %v1036_v32, 16 }
 0x202   : > { %v1327_v26 = vpop.xlane.xlu0 %1326 }
 0x203   : > { %v1349_v27 = vsub.f32 %v1159_v39, %v1327_v26  ;;  %v2024_v39 = vcombine.high %v876_v5, %v883_v29 }
 0x205   : > { %v1357_v30 = vmul.f32 1.442695, %v1349_v27 }
 0x206   : > { %v1333_v35 = vpop.xlane.xlu0 %1332  ;;  %v1330_v36 = vpop.xlane.xlu1 %1329 }
 0x207   : > { %2160 = vpow2.f32 %v1357_v30  ;;  %v1351_v37 = vsub.f32 %v2414_v41, %v1333_v35  ;;  %v1350_v15 = vsub.f32 %v2416_v17, %v1330_v36  ;;  %v995_v41 = vrot.slane %v988_v16, %v2295_v23 }
 0x208   : > { %v1003_v17 = vrot.slane %v2024_v39, %v2295_v23 }
 0x209   : > { %v1361_v42 = vmul.f32 1.442695, %v1351_v37  ;;  %v1359_v38 = vmul.f32 1.442695, %v1350_v15 }
 0x20a   : > { %v1336_v46 = vpop.xlane.xlu0 %1335  ;;  %v827_v47 = vpop.permute.xlu1 %826  ;;  %v1004_v52 = vcombine.low %v995_v41, %v1003_v17 }
 0x20b   : > { %2162 = vpow2.f32 %v1361_v42  ;;  %v1352_v50 = vsub.f32 %v2422_v43, %v1336_v46  ;;  %v848_v51 = vpack.i.b16 %v827_v47, %v823_v25  ;;  %v850_v54 = vshrl.u32 %v827_v47, 16 }
 0x20c   : > { %2164 = vpow2.f32 %v1359_v38  ;;  %v1011_v24 = vrot.slane %v1004_v52, %v2298_v28 }
 0x20d   : > { %v1363_v55 = vmul.f32 1.442695, %v1352_v50  ;;  %v851_v56 = vpack.i.b16 %v850_v54, %v849_v44  ;;  %v935_v57 = vrot.slane %v848_v51, %v2295_v23 }
 0x20e   : > { %v1339_v43 = vpop.xlane.xlu0 %1338  ;;  %v1091_v37 = vshrl.u32 %v1011_v24, 16  ;;  %v1012_v2 = vcombine.high %v1011_v24, %v2207_v18  ;;  %v1090_v47 = vpack.i.b16 %v1036_v32, %v1011_v24 }
 0x20f   : > { %2166 = vpow2.f32 %v1363_v55  ;;  %v936_v61 = vcombine.low %v927_v6, %v935_v57  ;;  %v937_v62 = vcombine.high %v927_v6, %v935_v57  ;;  %v969_v63 = vrot.slane %v851_v56, %v2295_v23 }
 0x210   : > { %v1353_v0 = vsub.f32 %v2424_v45, %v1339_v43  ;;  %v1093_v6 = vpack.i.b16 %v1092_v8, %v1091_v37  ;;  %v1097_v55 = vshrl.u32 %v1012_v2, 16  ;;  %v1098_v56 = vshrl.u32 %v1037_v3, 16 }
 0x211   : > { %v944_v1 = vrot.slane %v936_v61, %v2298_v28  ;;  %v951_v7 = vrot.slane %v937_v62, %v2298_v28  ;;  %v970_v9 = vcombine.low %v961_v58, %v969_v63  ;;  %v971_v10 = vcombine.high %v961_v58, %v969_v63 }
 0x212   : > { %v1365_v12 = vmul.f32 1.442695, %v1353_v0  ;;  %v1345_v13 = vpop.xlane.xlu0 %1344  ;;  %v1096_v63 = vpack.i.b16 %v1037_v3, %v1012_v2 }
 0x213   : > { %v978_v14 = vrot.slane %v970_v9, %v2298_v28  ;;  %v985_v19 = vrot.slane %v971_v10, %v2298_v28  ;;  %v1038_v20 = vcombine.low %v944_v1, %v951_v7  ;;  %v2026_v21 = vcombine.high %v944_v1, %v951_v7 }
 0x214   : > { %v2472_v22 = vpop.eup %2160  ;;  %2168 = vpow2.f32 %v1365_v12  ;;  %v1355_v45 = vsub.f32 %v2428_v48, %v1345_v13  ;;  %v1099_v7 = vpack.i.b16 %v1098_v56, %v1097_v55 }
 0x215   : > { %v1045_v25 = vrot.slane %v1038_v20, %v2295_v23  ;;  %v1053_v26 = vrot.slane %v2026_v21, %v2295_v23  ;;  %v1063_v27 = vcombine.low %v978_v14, %v985_v19  ;;  %v2027_v5 = vcombine.high %v978_v14, %v985_v19 }
 0x216   : > { %v1369_v29 = vmul.f32 1.442695, %v1355_v45  ;;  %v1348_v30 = vpop.xlane.xlu0 %1347  ;;  %v1373_v31 = vsel %vm1118_vm1, %v2472_v22, 0.0 }
 0x217   : > { %v1054_v33 = vcombine.low %v1045_v25, %v1053_v26  ;;  %v1070_v34 = vrot.slane %v1063_v27, %v2295_v23  ;;  %v1078_v48 = vrot.slane %v2027_v5, %v2295_v23  ;;  %v1356_v35 = vsub.f32 %v2434_v53, %v1348_v30  ;;  %1374 = vadd.xlane.f32.xlu1 %v1373_v31 }
 0x218   : > { %v2163_v36 = vpop.eup %2162  ;;  %2170 = vpow2.f32 %v1369_v29 }
 0x219   : > { %v2165_v15 = vpop.eup %2164  ;;  %v1079_v16 = vcombine.low %v1070_v34, %v1078_v48  ;;  %v1371_v39 = vmul.f32 1.442695, %v1356_v35  ;;  %v1379_v40 = vsel %vm1118_vm1, %v2163_v36, 0.0  ;;  %v1061_v42 = vrot.slane %v1054_v33, %v2298_v28 }
 0x21a   : > { %v1376_v38 = vsel %vm1118_vm1, %v2165_v15, 0.0  ;;  %v1405_v1 = vpack.c.bf16 %v2165_v15, %v2472_v22 }
 0x21b   : > { %1377 = vadd.xlane.f32.xlu0 %v1376_v38  ;;  %1380 = vadd.xlane.f32.xlu1 %v1379_v40  ;;  %v1086_v53 = vrot.slane %v1079_v16, %v2298_v28  ;;  %v1062_v44 = vcombine.high %v1061_v42, %v2207_v18  ;;  %2172 = vpow2.f32 %v1371_v39  ;;  %v1103_v50 = vshrl.u32 %v1061_v42, 16 }
 0x21c   : > { %v2167_v46 = vpop.eup %2166 }
 0x21d   : > { %v1382_v51 = vsel %vm1118_vm1, %v2167_v46, 0.0  ;;  %v1102_v54 = vpack.i.b16 %v1086_v53, %v1061_v42  ;;  %v1104_v41 = vshrl.u32 %v1086_v53, 16  ;;  %v1087_v17 = vcombine.high %v1086_v53, %v2207_v18 }
 0x21e   : > { %v1109_v57 = vshrl.u32 %v1062_v44, 16  ;;  %v1406_v9 = vpack.c.bf16 %v2167_v46, %v2163_v36 }
 0x21f   : > { %1383 = vadd.xlane.f32.xlu0 %v1382_v51  ;;  %v2040_v58 = vcombine.low %v1090_v47, %v1102_v54  ;;  %v1105_v59 = vpack.i.b16 %v1104_v41, %v1103_v50  ;;  %v1108_v60 = vpack.i.b16 %v1087_v17, %v1062_v44  ;;  %v1110_v43 = vshrl.u32 %v1087_v17, 16 }
 0x221   : > { %v2169_v61 = vpop.eup %2168  ;;  %2103 = vmatpush3.bf16.msra.mxu0 %v2040_v58  ;;  %v2042_v62 = vcombine.low %v1093_v6, %v1105_v59  ;;  %v1111_v52 = vpack.i.b16 %v1110_v43, %v1109_v57  ;;  %v2044_v18 = vcombine.low %v1096_v63, %v1108_v60 }
 0x222   : > { %v1385_v0 = vsel %vm1118_vm1, %v2169_v61, 0.0  ;;  %2114 = vmatprep.subr.bf16.mxu0 %v2203_v4 }
 0x223   : > { %1386 = vadd.xlane.f32.xlu1 %v1385_v0  ;;  %2109 = vmatpush3.bf16.msra.mxu1 %v2042_v62  ;;  %v2046_v11 = vcombine.low %v1099_v7, %v1111_v52 }
 0x224   : > { %2105 = vmatmul.mubr.msk.bf16.vlgmr.msra.gmra.mxu0 %vm1118_vm1, %v1405_v1  ;;  %2120 = vmatprep.subr.bf16.mxu1 %v2203_v4 }
 0x225   : > { %v2171_v10 = vpop.eup %2170  ;;  %2115 = vmatpush3.bf16.msra.mxu0 %v2044_v18  ;;  %2116 = vmatprep.mubr.msk.bf16.mxu0 %vm2204_vm0, %v2203_v4 }
 0x226   : > { %2111 = vmatmul.mubr.msk.bf16.vlgmr.msra.gmra.mxu1 %vm1118_vm1, %v1406_v9  ;;  %v1391_v12 = vsel %vm1118_vm1, %v2171_v10, 0.0 }
 0x227   : > { %1392 = vadd.xlane.f32.xlu1 %v1391_v12  ;;  %2121 = vmatpush3.bf16.msra.mxu1 %v2046_v11 }
 0x228   : > { %2122 = vmatprep.mubr.msk.bf16.mxu1 %vm2204_vm0, %v2203_v4  ;;  %v2173_v13 = vpop.eup %2172 }
 0x229   : > { %v1408_v14 = vpack.c.bf16 %v2173_v13, %v2171_v10  ;;  %v1394_v25 = vsel %vm1118_vm1, %v2173_v13, 0.0 }
 0x22e   : > { %2123 = vmatmul.mubr.msk.bf16.vlgmr.msra.gmra.mxu1 %vm1118_vm1, %v1408_v14 }
 0x23b   : > { %v1342_v19 = vpop.xlane.xlu1 %1341 }
 0x23c   : > { %v1354_v20 = vsub.f32 %v2430_v49, %v1342_v19 }
 0x23e   : > { %v1367_v21 = vmul.f32 1.442695, %v1354_v20 }
 0x240   : > { %2174 = vpow2.f32 %v1367_v21 }
 0x24d   : > { %v2175_v22 = vpop.eup %2174 }
 0x24e   : > { %v1388_v45 = vsel %vm1118_vm1, %v2175_v22, 0.0  ;;  %v1407_v24 = vpack.c.bf16 %v2175_v22, %v2169_v61 }
 0x24f   : > { %1389 = vadd.xlane.f32.xlu0 %v1388_v45 }
 0x250   : > { %2117 = vmatmul.mubr.msk.bf16.vlgmr.msra.gmra.mxu0 %vm1118_vm1, %v1407_v24 }
 0x253   : > { %1395 = vadd.xlane.f32.xlu0 %v1394_v25 }
 0x2a0   : > { %v1375_v49 = vpop.xlane.xlu1 %1374 }
 0x2a4   : > { %v1378_v48 = vpop.xlane.xlu0 %1377  ;;  %v1381_v35 = vpop.xlane.xlu1 %1380 }
 0x2a8   : > { %v1384_v16 = vpop.xlane.xlu0 %1383 }
 0x2ac   : > { %v1387_v15 = vpop.xlane.xlu1 %1386 }
 0x2b0   : > { %v1393_v39 = vpop.xlane.xlu1 %1392 }
 0x2b1   : > { %2176 = vrcp.f32 %v1393_v39 }
 0x2b2   : > { %2178 = vrcp.f32 %v1381_v35 }
 0x2b3   : > { %2180 = vrcp.f32 %v1375_v49 }
 0x2b4   : > { %2182 = vrcp.f32 %v1387_v15 }
 0x2be   : > { %v2177_v38 = vpop.eup %2176 }
 0x2bf   : > { %v2179_v2 = vpop.eup %2178 }
 0x2c0   : > { %v2181_v53 = vpop.eup %2180 }
 0x2c1   : > { %v2183_v44 = vpop.eup %2182 }
 0x2d8   : > { %v1390_v40 = vpop.xlane.xlu0 %1389 }
 0x2dc   : > { %v1396_v42 = vpop.xlane.xlu0 %1395 }
 0x2dd   : > { %2184 = vrcp.f32 %v1396_v42 }
 0x2de   : > { %2186 = vrcp.f32 %v1384_v16 }
 0x2df   : > { %2188 = vrcp.f32 %v1390_v40 }
 0x2e0   : > { %2190 = vrcp.f32 %v1378_v48 }
 0x2e4   : > { %v1450_v4 = vpop.f32.mrf.mxu0 }
 0x2e5   : > { %v1601_v51 = vmul.f32 %v2181_v53, %v1450_v4 }
 0x2e6   : > { %v2106_v26 = vpop.f32.mrf.mxu0  ;;  %v1498_v27 = vpop.f32.mrf.mxu1 }
 0x2e7   : > { %v1603_v3 = vmul.f32 %v2179_v2, %v1498_v27 }
 0x2e8   : > { %v1453_v5 = vpop.f32.mrf.mxu0  ;;  %v2112_v29 = vpop.f32.mrf.mxu1 }
 0x2ea   : > { %v2107_v30 = vpop.f32.mrf.mxu0  ;;  %v1501_v31 = vpop.f32.mrf.mxu1 }
 0x2eb   : > { %v2185_v50 = vpop.eup %2184 }
 0x2ec   : > { %v2113_v32 = vpop.f32.mrf.mxu1  ;;  %v2187_v55 = vpop.eup %2186 }
 0x2ed   : > { %v2189_v58 = vpop.eup %2188  ;;  %v1604_v59 = vmul.f32 %v2187_v55, %v1501_v31 }
 0x2ee   : > { %v1594_v33 = vpop.f32.mrf.mxu1  ;;  %v2191_v61 = vpop.eup %2190 }
 0x2ef   : > { %v1607_v8 = vmul.f32 %v2177_v38, %v1594_v33  ;;  %v1602_v1 = vmul.f32 %v2191_v61, %v1453_v5 }
 0x2f0   : > { %v2124_v34 = vpop.f32.mrf.mxu1 }
 0x2f1   : > { %v1625_v46 = vcombine.low %v1603_v3, %v1607_v8  ;;  %v1626_v54 = vcombine.high %v1603_v3, %v1607_v8 }
 0x2f2   : > { %v1597_v36 = vpop.f32.mrf.mxu1 }
 0x2f3   : > { %v1608_v17 = vmul.f32 %v2185_v50, %v1597_v36  ;;  %v1633_v60 = vrot.slane %v1625_v46, %v2295_v23  ;;  %v1640_v62 = vrot.slane %v1626_v54, %v2295_v23 }
 0x2f4   : > { %v2125_v37 = vpop.f32.mrf.mxu1 }
 0x2f5   : > { %v1693_v18 = vcombine.low %v1604_v59, %v1608_v17  ;;  %v1694_v7 = vcombine.high %v1604_v59, %v1608_v17 }
 0x2f7   : > { %v1701_v24 = vrot.slane %v1693_v18, %v2295_v23  ;;  %v1708_v25 = vrot.slane %v1694_v7, %v2295_v23 }
 0x310   : > { %v1546_v47 = vpop.f32.mrf.mxu0 }
 0x311   : > { %v1605_v41 = vmul.f32 %v2183_v44, %v1546_v47 }
 0x312   : > { %v2118_v6 = vpop.f32.mrf.mxu0 }
 0x313   : > { %v1609_v56 = vcombine.low %v1601_v51, %v1605_v41  ;;  %v1610_v57 = vcombine.high %v1601_v51, %v1605_v41 }
 0x314   : > { %v1549_v43 = vpop.f32.mrf.mxu0 }
 0x315   : > { %v1617_v63 = vrot.slane %v1609_v56, %v2295_v23  ;;  %v1624_v52 = vrot.slane %v1610_v57, %v2295_v23  ;;  %v1606_v0 = vmul.f32 %v2189_v58, %v1549_v43 }
 0x316   : > { %v2119_v9 = vpop.f32.mrf.mxu0 }
 0x317   : > { %v1641_v10 = vcombine.low %v1617_v63, %v1633_v60  ;;  %v1642_v11 = vcombine.high %v1617_v63, %v1633_v60  ;;  %v1657_v12 = vcombine.low %v1624_v52, %v1640_v62  ;;  %v1658_v13 = vcombine.high %v1624_v52, %v1640_v62 }
 0x318   : > { %v1677_v14 = vcombine.low %v1602_v1, %v1606_v0  ;;  %v1678_v19 = vcombine.high %v1602_v1, %v1606_v0 }
 0x319   : > { %v1649_v20 = vrot.slane %v1641_v10, %v2298_v28  ;;  %v1656_v21 = vrot.slane %v1642_v11, %v2298_v28  ;;  %v1665_v22 = vrot.slane %v1657_v12, %v2298_v28  ;;  %v1672_v45 = vrot.slane %v1658_v13, %v2298_v28 }
 0x31a   : > { %v1685_v4 = vrot.slane %v1677_v14, %v2295_v23  ;;  %v1692_v26 = vrot.slane %v1678_v19, %v2295_v23 }
 0x31b   : > { %v1745_v27 = vcombine.low %v1649_v20, %v1656_v21  ;;  %v2048_v5 = vcombine.high %v1649_v20, %v1656_v21  ;;  %v1761_v29 = vcombine.low %v1665_v22, %v1672_v45  ;;  %v2049_v30 = vcombine.high %v1665_v22, %v1672_v45 }
 0x31c   : > { %v1709_v31 = vcombine.low %v1685_v4, %v1701_v24  ;;  %v1710_v49 = vcombine.high %v1685_v4, %v1701_v24  ;;  %v1725_v32 = vcombine.low %v1692_v26, %v1708_v25  ;;  %v1726_v33 = vcombine.high %v1692_v26, %v1708_v25 }
 0x31d   : > { %v1752_v34 = vrot.slane %v1745_v27, %v2295_v23  ;;  %v1760_v48 = vrot.slane %v2048_v5, %v2295_v23  ;;  %v1768_v35 = vrot.slane %v1761_v29, %v2295_v23  ;;  %v1776_v36 = vrot.slane %v2049_v30, %v2295_v23 }
 0x31e   : > { %v1717_v37 = vrot.slane %v1709_v31, %v2298_v28  ;;  %v1724_v15 = vrot.slane %v1710_v49, %v2298_v28  ;;  %v1733_v16 = vrot.slane %v1725_v32, %v2298_v28  ;;  %v1740_v39 = vrot.slane %v1726_v33, %v2298_v28 }
 0x31f   : > { %v1778_v40 = vcombine.high %v1752_v34, %v1760_v48  ;;  %v1794_v42 = vcombine.high %v1768_v35, %v1776_v36  ;;  %v1777_v38 = vcombine.low %v1752_v34, %v1760_v48  ;;  %v1793_v8 = vcombine.low %v1768_v35, %v1776_v36 }
 0x320   : > { %v1813_v2 = vcombine.low %v1717_v37, %v1724_v15  ;;  %v2050_v3 = vcombine.high %v1717_v37, %v1724_v15  ;;  %v1829_v53 = vcombine.low %v1733_v16, %v1740_v39  ;;  %v2051_v44 = vcombine.high %v1733_v16, %v1740_v39 }
 0x321   : > { %v1785_v46 = vrot.slane %v1777_v38, %v2298_v28  ;;  %v1801_v47 = vrot.slane %v1793_v8, %v2298_v28  ;;  %v1792_v17 = vrot.slane %v1778_v40, %v2298_v28  ;;  %v1808_v6 = vrot.slane %v1794_v42, %v2298_v28 }
 0x322   : > { %v1820_v50 = vrot.slane %v1813_v2, %v2295_v23  ;;  %v1828_v51 = vrot.slane %v2050_v3, %v2295_v23  ;;  %v1836_v54 = vrot.slane %v1829_v53, %v2295_v23  ;;  %v1844_v41 = vrot.slane %v2051_v44, %v2295_v23 }
 0x323   : > { %v1809_v55 = vcombine.low %v1785_v46, %v1801_v47  ;;  %v1811_v63 = vcombine.low %v1792_v17, %v1808_v6  ;;  %v1810_v23 = vcombine.high %v1785_v46, %v1801_v47  ;;  %v1812_v10 = vcombine.high %v1792_v17, %v1808_v6 }
 0x324   : > { %v1846_v56 = vcombine.high %v1820_v50, %v1828_v51  ;;  %v1862_v57 = vcombine.high %v1836_v54, %v1844_v41  ;;  %v1845_v58 = vcombine.low %v1820_v50, %v1828_v51  ;;  %v1861_v59 = vcombine.low %v1836_v54, %v1844_v41 }
 0x326   : > { %v1860_v60 = vrot.slane %v1846_v56, %v2298_v28  ;;  %v1876_v43 = vrot.slane %v1862_v57, %v2298_v28  ;;  %v1853_v61 = vrot.slane %v1845_v58, %v2298_v28  ;;  %v1869_v62 = vrot.slane %v1861_v59, %v2298_v28 }
 0x328   : > { %v1879_v52 = vcombine.low %v1860_v60, %v1876_v43  ;;  %v1878_v0 = vcombine.high %v1853_v61, %v1869_v62  ;;  %v1877_v1 = vcombine.low %v1853_v61, %v1869_v62  ;;  %v1880_v9 = vcombine.high %v1860_v60, %v1876_v43 }
 0x32a   : > { %v2150_v18 = vpack.i.bf16 %v1879_v52, %v1811_v63  ;;  %v2145_v7 = vpack.i.bf16 %v1878_v0, %v1810_v23  ;;  %v2155_v11 = vpack.i.bf16 %v1880_v9, %v1812_v10 }
 0x32c   : > { %2151 = vrot.lane.b32.xlu0 %v2150_v18, %s2208_s27  ;;  %2146 = vrot.lane.b32.xlu1 %v2145_v7, %s2209_s28 }
 0x330   : > { %2156 = vrot.lane.b32.xlu1 %v2155_v11, %s2210_s29 }
 0x39e   : > { %v2152_v12 = vpop.permute.xlu0 %2151  ;;  %v2147_v13 = vpop.permute.xlu1 %2146 }
 0x39f   : > { %v2149_v28 = vunpack.i.h.bf16 %v2147_v13  ;;  %v2148_v14 = vunpack.i.l.bf16 %v2147_v13  ;;  %v2154_v19 = vunpack.i.h.bf16 %v2152_v12  ;;  %v2153_v20 = vunpack.i.l.bf16 %v2152_v12 }
 0x3a1   : > { %v1905_v21 = vsel %vm1118_vm1, %v1809_v55, %v2148_v14  ;;  %v1906_v22 = vsel %vm1118_vm1, %v1877_v1, %v2149_v28 }
 0x3a2   : > { %v2157_v45 = vpop.permute.xlu1 %2156  ;;  %v1908_v4 = vsel %vm1907_vm2, %v1905_v21, %v2153_v20  ;;  %v1909_v26 = vsel %vm1907_vm2, %v1906_v22, %v2154_v19 }
 0x3a3   : > { %v2159_v24 = vunpack.i.h.bf16 %v2157_v45  ;;  %v2158_v25 = vunpack.i.l.bf16 %v2157_v45 }
 0x3a5   : > { %v1911_v27 = vsel %vm1910_vm3, %v1908_v4, %v2158_v25  ;;  %v1912_v5 = vsel %vm1910_vm3, %v1909_v26, %v2159_v24 }
 0x3a6   : > { %v2060_v29 = vpack.c.bf16 %v1911_v27, %v1911_v27  ;;  %v2061_v30 = vpack.c.bf16 %v1912_v5, %v1912_v5 }
 0x3a8   : > { %1922 = vst.msk [vmem:[%s210_s5] sm:$0xf] %vm1921_vm4, %v2060_v29  ;;  %1923 = vst.msk [vmem:[%s210_s5 + $0x4] sm:$0xf] %vm1921_vm4, %v2061_v30 }
 0x3a9 PF: > { %s13_s12 = sadd.s32 1, %s2198_s12  }
 0x3aa   : > { %p10_p4 = scmp.ge.s32.totalorder %s13_s12, 4  }
 0x3ac   :  { %12 = sbr.rel (!%p10_p4) target bundleno = 1 (0x1), region = 68 }

</bundles_post_ra>
